<compile_context>
chip_gen: v6e
topology: v6e:2x2x1
jax: 0.10.0
libtpu: 0.0.40
codegen_flags: <defaults>
</compile_context>

<pallas_src>
import functools

import jax
import jax.numpy as jnp
from jax import lax
from jax.experimental import pallas as pl
from jax.experimental.pallas import tpu as pltpu


# ----------------------------- Pallas kernel -------------------------------- #

def _block_kernel(ph_ref, w1_ref, b1_ref, w2_ref, b2_ref, sc_ref, scw_ref,
                  scb_ref, o_ref, y1_ref, *, stride, Ho, Wo, cin, n_out, cb,
                  rb1, rb2, merge_k1):
    """Fused BasicBlock forward: one image x one 128-wide output-channel block.

    ph_ref : (s*s, Hpp, Wpp, cin)  bf16 phase grids of the image (conv1 input)
    w1_ref : (9*cin, n_out)        bf16, BN1 scale folded, (kh, kw, cin) rows
    b1_ref : (1, n_out)            f32 folded BN1 bias
    w2_ref : (9*n_out, cb)         bf16 conv2 weight block, BN2 scale folded
    b2_ref : (1, cb)               f32 folded BN2 bias block
    sc_ref : (Ho*Wo, cin)          bf16 shortcut input (stride-sampled x), unpadded
    scw_ref: (cin, cb)             bf16 1x1 shortcut weight block (projection+BN
                                   folded, or a zero-padded identity)
    scb_ref: (1, cb)               f32 shortcut bias block
    o_ref  : (Ho*Wo, cb)           bf16 output block (lane-dense)
    y1_ref : (Ho+2, Wo+2, n_out)   bf16 VMEM scratch: conv1 output + zero border
    """
    s = stride
    cblk = pl.program_id(1)

    # --------------- conv1 + BN1 + ReLU -> VMEM scratch (once per image) ----
    @pl.when(cblk == 0)
    def _conv1():
        y1_ref[...] = jnp.zeros_like(y1_ref)          # also zeroes the border
        for r0 in range(0, Ho, rb1):                  # bounded f32 accumulator
            acc = jnp.zeros((rb1 * Wo, n_out), jnp.float32)
            if merge_k1:
                # cin % 128 == 0: lane-aligned dw merge, 3 matmuls of K=3*cin.
                for dh in range(3):
                    parts = [ph_ref[(dh % s) * s + (dw % s),
                                    pl.ds(r0 + dh // s, rb1),
                                    pl.ds(dw // s, Wo), :]
                             for dw in range(3)]
                    tap = jnp.concatenate(parts, axis=-1)
                    tap = tap.reshape(rb1 * Wo, 3 * cin)
                    acc = acc + jnp.dot(
                        tap, w1_ref[pl.ds(dh * 3 * cin, 3 * cin), :],
                        preferred_element_type=jnp.float32)
            else:
                # small / unaligned cin: 9 taps of K = cin (all offsets static).
                for dh in range(3):
                    for dw in range(3):
                        p = (dh % s) * s + (dw % s)
                        tap = ph_ref[p, pl.ds(r0 + dh // s, rb1),
                                     pl.ds(dw // s, Wo), :]
                        tap = tap.reshape(rb1 * Wo, cin)
                        acc = acc + jnp.dot(
                            tap, w1_ref[pl.ds((dh * 3 + dw) * cin, cin), :],
                            preferred_element_type=jnp.float32)
            act = jnp.maximum(acc + b1_ref[...], 0.0)
            y1_ref[pl.ds(1 + r0, rb1), pl.ds(1, Wo), :] = (
                act.reshape(rb1, Wo, n_out).astype(y1_ref.dtype))

    # ------ conv2 + BN2 + shortcut + add + ReLU for this channel block -------
    for r0 in range(0, Ho, rb2):                      # bounded f32 accumulator
        acc = jnp.zeros((rb2 * Wo, cb), jnp.float32)
        for dh in range(3):                           # 3 matmuls of K = 3*n_out
            parts = [y1_ref[pl.ds(r0 + dh, rb2), pl.ds(dw, Wo), :]
                     for dw in range(3)]
            tap = jnp.concatenate(parts, axis=-1).reshape(rb2 * Wo, 3 * n_out)
            acc = acc + jnp.dot(
                tap, w2_ref[pl.ds(dh * 3 * n_out, 3 * n_out), :],
                preferred_element_type=jnp.float32)
        y = acc + b2_ref[...]
        sc = sc_ref[pl.ds(r0 * Wo, rb2 * Wo), :]      # bf16, unpadded channels
        y = y + jnp.dot(sc, scw_ref[...],
                        preferred_element_type=jnp.float32) + scb_ref[...]
        o_ref[pl.ds(r0 * Wo, rb2 * Wo), :] = (
            jnp.maximum(y, 0.0).astype(o_ref.dtype))


# ------------------------------- JAX glue ----------------------------------- #

def _round_up(x, m):
    return (x + m - 1) // m * m


def _pad_last(a, n):
    return jnp.pad(a, [(0, 0)] * (a.ndim - 1) + [(0, n - a.shape[-1])])


def _fold_bn(gamma, beta, mean, var, eps=1e-5):
    scale = gamma / jnp.sqrt(var + eps)
    return scale, beta - mean * scale


def _w3x3_to_mat(w_oihw):
    # (Cout, Cin, 3, 3) -> (9*Cin, Cout), row order (kh, kw, cin).
    return jnp.transpose(w_oihw, (2, 3, 1, 0)).reshape(-1, w_oihw.shape[0])


def _make_phases(x_nhwc, stride):
    """Zero-pad 1 px and split into stride*stride phase grids (image-major).

    For conv output (r, c) and kernel tap (dh, dw): phase p = (dh%s)*s + (dw%s),
    phase row r + dh//s, phase col c + dw//s.  The largest extra offset is
    (2 // s), so Hpp = Ho + (2 // s) rows suffice (explicit parentheses)."""
    N, H, W, C = x_nhwc.shape
    s = stride
    Ho = (H + 2 - 3) // s + 1
    Wo = (W + 2 - 3) // s + 1
    Hpp = Ho + (2 // s)
    Wpp = Wo + (2 // s)
    # pad generously on bottom/right so each phase slice has >= Hpp/Wpp rows;
    # the extra rows/cols are never addressed by valid taps.
    xp = jnp.pad(x_nhwc, ((0, 0), (1, 1 + s), (1, 1 + s), (0, 0)))
    grids = []
    for a in range(s):
        for b in range(s):
            grids.append(xp[:, a::s, b::s, :][:, :Hpp, :Wpp, :])
    ph = jnp.stack(grids, axis=1)                     # (N, s*s, Hpp, Wpp, C)
    return ph.reshape(N * s * s, Hpp, Wpp, C), (Ho, Wo)


def _pick_row_block(Ho, Wo, ncols, budget_bytes=128 * 1024):
    """Largest divisor of Ho whose (rows*Wo, ncols) f32 accumulator fits budget."""
    rb = 1
    for cand in range(1, Ho + 1):
        if Ho % cand == 0 and cand * Wo * ncols * 4 <= budget_bytes:
            rb = cand
    return rb


def _vmem_limit_bytes():
    # Generation-aware scoped-VMEM limit: ~3/4 of physical VMEM
    # (128 MiB on v5e/v6e -> 96 MiB, 64 MiB on v7x -> 48 MiB), 32 MiB fallback.
    try:
        cap = int(pltpu.get_tpu_info().vmem_capacity_bytes)
        return int(max(32 * 1024 * 1024, min(cap * 3 // 4, 96 * 1024 * 1024)))
    except Exception:
        return 32 * 1024 * 1024


def basic_block_forward(x_nchw, params, stride):
    """Pallas implementation of BasicBlock.forward (inference). NCHW in/out."""
    N, Cin, H, W = x_nchw.shape
    Cout = params["w1"].shape[0]
    Np = _round_up(Cout, 128)            # lane-dense padded channel count
    CB = 128                             # output-channel block per grid step
    n_cblk = Np // CB

    x = jnp.transpose(x_nchw, (0, 2, 3, 1)).astype(jnp.float32)     # NHWC

    # conv1 (3x3, stride s) + BN1: fold scale into bf16 weights, f32 bias.
    s1, b1 = _fold_bn(params["g1"], params["be1"], params["m1"], params["v1"])
    w1 = _w3x3_to_mat(params["w1"]) * s1[None, :]
    w1 = _pad_last(w1, Np).astype(jnp.bfloat16)                     # (9*Cin, Np)
    b1p = _pad_last(b1[None, :], Np).astype(jnp.float32)            # (1, Np)

    # conv2 (3x3, stride 1) + BN2: pad both K (conv1 channels) and N to Np.
    s2, b2 = _fold_bn(params["g2"], params["be2"], params["m2"], params["v2"])
    w2 = jnp.transpose(params["w2"], (2, 3, 1, 0)) * s2[None, None, None, :]
    w2p = jnp.zeros((3, 3, Np, Np), jnp.float32).at[:, :, :Cout, :Cout].set(w2)
    w2p = w2p.reshape(9 * Np, Np).astype(jnp.bfloat16)              # (9*Np, Np)
    b2p = _pad_last(b2[None, :], Np).astype(jnp.float32)            # (1, Np)

    # Shortcut as a 1x1 matmul: projection (+BN folded) or padded identity.
    if stride != 1 or Cin != Cout:
        ss, bs = _fold_bn(params["gs"], params["bes"], params["ms"], params["vs"])
        ws = jnp.transpose(params["ws"], (2, 3, 1, 0)).reshape(Cin, Cout)
        wsp = _pad_last(ws * ss[None, :], Np).astype(jnp.bfloat16)  # (Cin, Np)
        bsp = _pad_last(bs[None, :], Np).astype(jnp.float32)        # (1, Np)
    else:
        wsp = _pad_last(jnp.eye(Cin, dtype=jnp.float32), Np).astype(jnp.bfloat16)
        bsp = jnp.zeros((1, Np), jnp.float32)

    # conv1 input as stride-phase grids (bf16, no 9x im2col expansion).
    ph, (Ho, Wo) = _make_phases(x.astype(jnp.bfloat16), stride)
    s2q = stride * stride
    Hpp, Wpp = ph.shape[1], ph.shape[2]
    M = Ho * Wo

    # Shortcut activations: stride-sampled x, bf16, channel-UNPADDED.
    xs = x[:, ::stride, ::stride, :].reshape(N * M, Cin).astype(jnp.bfloat16)

    rb1 = _pick_row_block(Ho, Wo, Np)    # conv1 accumulator row chunk
    rb2 = _pick_row_block(Ho, Wo, CB)    # conv2 accumulator row chunk

    kernel = functools.partial(
        _block_kernel, stride=stride, Ho=Ho, Wo=Wo, cin=Cin, n_out=Np, cb=CB,
        rb1=rb1, rb2=rb2, merge_k1=(Cin % 128 == 0))

    out = pl.pallas_call(
        kernel,
        out_shape=jax.ShapeDtypeStruct((N * M, Np), jnp.bfloat16),
        grid=(N, n_cblk),
        in_specs=[
            pl.BlockSpec((s2q, Hpp, Wpp, Cin), lambda n, c: (n, 0, 0, 0)),
            pl.BlockSpec((9 * Cin, Np), lambda n, c: (0, 0)),   # VMEM-resident
            pl.BlockSpec((1, Np), lambda n, c: (0, 0)),
            pl.BlockSpec((9 * Np, CB), lambda n, c: (0, c)),
            pl.BlockSpec((1, CB), lambda n, c: (0, c)),
            pl.BlockSpec((M, Cin), lambda n, c: (n, 0)),
            pl.BlockSpec((Cin, CB), lambda n, c: (0, c)),
            pl.BlockSpec((1, CB), lambda n, c: (0, c)),
        ],
        out_specs=pl.BlockSpec((M, CB), lambda n, c: (n, c)),
        scratch_shapes=[pltpu.VMEM((Ho + 2, Wo + 2, Np), jnp.bfloat16)],
        compiler_params=pltpu.CompilerParams(
            dimension_semantics=("parallel", "arbitrary"),
            vmem_limit_bytes=_vmem_limit_bytes()),
    )(ph, w1, b1p, w2p, b2p, xs, wsp, bsp)

    out = out.reshape(N, Ho, Wo, Np)[:, :, :, :Cout].astype(jnp.float32)
    return jnp.transpose(out, (0, 3, 1, 2))                          # NCHW


# --------------------------- pure-JAX reference ------------------------------ #

def _bn_ref(y_nchw, gamma, beta, mean, var, eps=1e-5):
    g = gamma.reshape(1, -1, 1, 1)
    b = beta.reshape(1, -1, 1, 1)
    m = mean.reshape(1, -1, 1, 1)
    v = var.reshape(1, -1, 1, 1)
    return (y_nchw - m) / jnp.sqrt(v + eps) * g + b


def basic_block_ref(x_nchw, params, stride):
    dn = ("NCHW", "OIHW", "NCHW")
    y = lax.conv_general_dilated(x_nchw, params["w1"], (stride, stride),
                                 [(1, 1), (1, 1)], dimension_numbers=dn)
    y = jnp.maximum(_bn_ref(y, params["g1"], params["be1"], params["m1"],
                            params["v1"]), 0.0)
    y = lax.conv_general_dilated(y, params["w2"], (1, 1),
                                 [(1, 1), (1, 1)], dimension_numbers=dn)
    y = _bn_ref(y, params["g2"], params["be2"], params["m2"], params["v2"])

    Cin, Cout = x_nchw.shape[1], params["w1"].shape[0]
    if stride != 1 or Cin != Cout:
        sc = lax.conv_general_dilated(x_nchw, params["ws"], (stride, stride),
                                      [(0, 0), (0, 0)], dimension_numbers=dn)
        sc = _bn_ref(sc, params["gs"], params["bes"], params["ms"],
                     params["vs"])
    else:
        sc = x_nchw
    return jnp.maximum(y + sc, 0.0)


# --------------------------------- main -------------------------------------- #

if __name__ == "__main__":
    key = jax.random.PRNGKey(0)

    def _bn_params(k, c):
        kg, kb, km, kv = jax.random.split(k, 4)
        return (1.0 + 0.1 * jax.random.normal(kg, (c,), jnp.float32),
                0.1 * jax.random.normal(kb, (c,), jnp.float32),
                0.1 * jax.random.normal(km, (c,), jnp.float32),
                jax.random.uniform(kv, (c,), jnp.float32, 0.5, 1.5))

    def _make_params(k, cin, cout, with_proj):
        ks = jax.random.split(k, 8)
        p = {}
        p["w1"] = 0.1 * jax.random.normal(ks[0], (cout, cin, 3, 3), jnp.float32)
        p["g1"], p["be1"], p["m1"], p["v1"] = _bn_params(ks[1], cout)
        p["w2"] = 0.1 * jax.random.normal(ks[2], (cout, cout, 3, 3), jnp.float32)
        p["g2"], p["be2"], p["m2"], p["v2"] = _bn_params(ks[3], cout)
        if with_proj:
            p["ws"] = 0.1 * jax.random.normal(ks[4], (cout, cin, 1, 1),
                                              jnp.float32)
            p["gs"], p["bes"], p["ms"], p["vs"] = _bn_params(ks[5], cout)
        return p

    k1, k2, kx1, kx2 = jax.random.split(key, 4)

    # Config A: projection shortcut (stride 2, channel change).
    N, Cin, Cout, H, W, stride = 2, 4, 8, 16, 16, 2
    params_a = _make_params(k1, Cin, Cout, with_proj=True)
    x_a = jax.random.normal(kx1, (N, Cin, H, W), jnp.float32)
    out_a = jax.block_until_ready(basic_block_forward(x_a, params_a, stride))
    ref_a = jax.block_until_ready(basic_block_ref(x_a, params_a, stride))
    assert out_a.shape == (N, Cout, H // stride, W // stride), out_a.shape
    # bf16 MXU operands / bf16 writeback -> loosened tolerance vs f32 reference.
    assert jnp.allclose(out_a, ref_a, rtol=5e-2, atol=5e-2), (
        "proj config max err = %f" % float(jnp.max(jnp.abs(out_a - ref_a))))

    # Config B: identity shortcut (stride 1, same channels).
    C = 8
    params_b = _make_params(k2, C, C, with_proj=False)
    x_b = jax.random.normal(kx2, (N, C, H, W), jnp.float32)
    out_b = jax.block_until_ready(basic_block_forward(x_b, params_b, 1))
    ref_b = jax.block_until_ready(basic_block_ref(x_b, params_b, 1))
    assert out_b.shape == (N, C, H, W), out_b.shape
    assert jnp.allclose(out_b, ref_b, rtol=5e-2, atol=5e-2), (
        "identity config max err = %f" % float(jnp.max(jnp.abs(out_b - ref_b))))

    print("KERNEL_OK")
</pallas_src>

<mosaic_0001>
module attributes {stable_mosaic.version = 11 : i64} {
  func.func @_block_kernel(%arg0: i32, %arg1: i32, %arg2: memref<4x9x9x4xbf16, #tpu.memory_space<vmem>>, %arg3: memref<36x128xbf16, #tpu.memory_space<vmem>>, %arg4: memref<1x128xf32, #tpu.memory_space<vmem>>, %arg5: memref<1152x128xbf16, #tpu.memory_space<vmem>>, %arg6: memref<1x128xf32, #tpu.memory_space<vmem>>, %arg7: memref<64x4xbf16, #tpu.memory_space<vmem>>, %arg8: memref<4x128xbf16, #tpu.memory_space<vmem>>, %arg9: memref<1x128xf32, #tpu.memory_space<vmem>>, %arg10: memref<64x128xbf16, #tpu.memory_space<vmem>>, %arg11: memref<10x10x128xbf16, #tpu.memory_space<vmem>>) attributes {dimension_semantics = [#tpu.dimension_semantics<parallel>, #tpu.dimension_semantics<arbitrary>], iteration_bounds = array<i64: 2, 1>, scalar_prefetch = 0 : i64, scratch_operands = 1 : i64, tpu.core_type = #tpu.core_type<tc>, window_params = [{transform_indices = @transform_0, window_bounds = array<i64: 4, 9, 9, 4>}, {pipeline_mode = #tpu.pipeline_mode<synchronous>, transform_indices = @transform_1, window_bounds = array<i64: 36, 128>}, {pipeline_mode = #tpu.pipeline_mode<synchronous>, transform_indices = @transform_2, window_bounds = array<i64: 1, 128>}, {transform_indices = @transform_3, window_bounds = array<i64: 1152, 128>}, {transform_indices = @transform_4, window_bounds = array<i64: 1, 128>}, {transform_indices = @transform_5, window_bounds = array<i64: 64, 4>}, {transform_indices = @transform_6, window_bounds = array<i64: 4, 128>}, {transform_indices = @transform_7, window_bounds = array<i64: 1, 128>}, {transform_indices = @transform_8, window_bounds = array<i64: 64, 128>}]} {
    %c0_i32 = arith.constant 0 : i32
    %0 = arith.cmpi eq, %arg1, %c0_i32 : i32
    %1 = arith.extui %0 : i1 to i32
    %c0_i32_0 = arith.constant 0 : i32
    %2 = arith.cmpi ne, %1, %c0_i32_0 : i32
    scf.if %2 {
      %cst_44 = arith.constant 0.000000e+00 : bf16
      %42 = vector.broadcast %cst_44 : bf16 to vector<10x10x128xbf16>
      %c0_45 = arith.constant 0 : index
      %c0_46 = arith.constant 0 : index
      %c0_47 = arith.constant 0 : index
      %43 = vector.load %arg11[%c0_45, %c0_46, %c0_47] : memref<10x10x128xbf16, #tpu.memory_space<vmem>>, vector<10x10x128xbf16>
      tpu.vector_store %arg11[%c0_45, %c0_46, %c0_47], %42 {strides = array<i32>} : memref<10x10x128xbf16, #tpu.memory_space<vmem>>, vector<10x10x128xbf16>,
      %cst_48 = arith.constant 0.000000e+00 : f32
      %44 = vector.broadcast %cst_48 : f32 to vector<64x128xf32>
      %c0_49 = arith.constant 0 : index
      %c0_50 = arith.constant 0 : index
      %c0_51 = arith.constant 0 : index
      %c0_52 = arith.constant 0 : index
      %45 = vector.load %arg2[%c0_49, %c0_50, %c0_51, %c0_52] : memref<4x9x9x4xbf16, #tpu.memory_space<vmem>>, vector<1x8x8x4xbf16>
      %46 = vector.shape_cast %45 : vector<1x8x8x4xbf16> to vector<8x8x4xbf16>
      %47 = vector.shape_cast %46 : vector<8x8x4xbf16> to vector<64x4xbf16>
      %c0_53 = arith.constant 0 : index
      %c0_54 = arith.constant 0 : index
      %48 = vector.load %arg3[%c0_53, %c0_54] : memref<36x128xbf16, #tpu.memory_space<vmem>>, vector<4x128xbf16>
      %cst_55 = arith.constant dense<0.000000e+00> : vector<64x128xf32>
      %49 = tpu.matmul %47, %48, %cst_55 {dimension_numbers = #tpu.dot_dimension_numbers<[1], [0], [0], [1], [0, 0, 1, 1], [], []>} : vector<64x4xbf16>, vector<4x128xbf16>, vector<64x128xf32> -> vector<64x128xf32>
      %50 = arith.addf %44, %49 : vector<64x128xf32>
      %c1_56 = arith.constant 1 : index
      %c0_57 = arith.constant 0 : index
      %c0_58 = arith.constant 0 : index
      %c0_59 = arith.constant 0 : index
      %51 = vector.load %arg2[%c1_56, %c0_57, %c0_58, %c0_59] : memref<4x9x9x4xbf16, #tpu.memory_space<vmem>>, vector<1x8x8x4xbf16>
      %52 = vector.shape_cast %51 : vector<1x8x8x4xbf16> to vector<8x8x4xbf16>
      %53 = vector.shape_cast %52 : vector<8x8x4xbf16> to vector<64x4xbf16>
      %c4 = arith.constant 4 : index
      %c0_60 = arith.constant 0 : index
      %54 = vector.load %arg3[%c4, %c0_60] : memref<36x128xbf16, #tpu.memory_space<vmem>>, vector<4x128xbf16>
      %cst_61 = arith.constant dense<0.000000e+00> : vector<64x128xf32>
      %55 = tpu.matmul %53, %54, %cst_61 {dimension_numbers = #tpu.dot_dimension_numbers<[1], [0], [0], [1], [0, 0, 1, 1], [], []>} : vector<64x4xbf16>, vector<4x128xbf16>, vector<64x128xf32> -> vector<64x128xf32>
      %56 = arith.addf %50, %55 : vector<64x128xf32>
      %c0_62 = arith.constant 0 : index
      %c0_63 = arith.constant 0 : index
      %c1_64 = arith.constant 1 : index
      %c0_65 = arith.constant 0 : index
      %57 = vector.load %arg2[%c0_62, %c0_63, %c1_64, %c0_65] : memref<4x9x9x4xbf16, #tpu.memory_space<vmem>>, vector<1x8x8x4xbf16>
      %58 = vector.shape_cast %57 : vector<1x8x8x4xbf16> to vector<8x8x4xbf16>
      %59 = vector.shape_cast %58 : vector<8x8x4xbf16> to vector<64x4xbf16>
      %c8 = arith.constant 8 : index
      %c0_66 = arith.constant 0 : index
      %60 = vector.load %arg3[%c8, %c0_66] : memref<36x128xbf16, #tpu.memory_space<vmem>>, vector<4x128xbf16>
      %cst_67 = arith.constant dense<0.000000e+00> : vector<64x128xf32>
      %61 = tpu.matmul %59, %60, %cst_67 {dimension_numbers = #tpu.dot_dimension_numbers<[1], [0], [0], [1], [0, 0, 1, 1], [], []>} : vector<64x4xbf16>, vector<4x128xbf16>, vector<64x128xf32> -> vector<64x128xf32>
      %62 = arith.addf %56, %61 : vector<64x128xf32>
      %c2_68 = arith.constant 2 : index
      %c0_69 = arith.constant 0 : index
      %c0_70 = arith.constant 0 : index
      %c0_71 = arith.constant 0 : index
      %63 = vector.load %arg2[%c2_68, %c0_69, %c0_70, %c0_71] : memref<4x9x9x4xbf16, #tpu.memory_space<vmem>>, vector<1x8x8x4xbf16>
      %64 = vector.shape_cast %63 : vector<1x8x8x4xbf16> to vector<8x8x4xbf16>
      %65 = vector.shape_cast %64 : vector<8x8x4xbf16> to vector<64x4xbf16>
      %c12 = arith.constant 12 : index
      %c0_72 = arith.constant 0 : index
      %66 = vector.load %arg3[%c12, %c0_72] : memref<36x128xbf16, #tpu.memory_space<vmem>>, vector<4x128xbf16>
      %cst_73 = arith.constant dense<0.000000e+00> : vector<64x128xf32>
      %67 = tpu.matmul %65, %66, %cst_73 {dimension_numbers = #tpu.dot_dimension_numbers<[1], [0], [0], [1], [0, 0, 1, 1], [], []>} : vector<64x4xbf16>, vector<4x128xbf16>, vector<64x128xf32> -> vector<64x128xf32>
      %68 = arith.addf %62, %67 : vector<64x128xf32>
      %c3 = arith.constant 3 : index
      %c0_74 = arith.constant 0 : index
      %c0_75 = arith.constant 0 : index
      %c0_76 = arith.constant 0 : index
      %69 = vector.load %arg2[%c3, %c0_74, %c0_75, %c0_76] : memref<4x9x9x4xbf16, #tpu.memory_space<vmem>>, vector<1x8x8x4xbf16>
      %70 = vector.shape_cast %69 : vector<1x8x8x4xbf16> to vector<8x8x4xbf16>
      %71 = vector.shape_cast %70 : vector<8x8x4xbf16> to vector<64x4xbf16>
      %c16 = arith.constant 16 : index
      %c0_77 = arith.constant 0 : index
      %72 = vector.load %arg3[%c16, %c0_77] : memref<36x128xbf16, #tpu.memory_space<vmem>>, vector<4x128xbf16>
      %cst_78 = arith.constant dense<0.000000e+00> : vector<64x128xf32>
      %73 = tpu.matmul %71, %72, %cst_78 {dimension_numbers = #tpu.dot_dimension_numbers<[1], [0], [0], [1], [0, 0, 1, 1], [], []>} : vector<64x4xbf16>, vector<4x128xbf16>, vector<64x128xf32> -> vector<64x128xf32>
      %74 = arith.addf %68, %73 : vector<64x128xf32>
      %c2_79 = arith.constant 2 : index
      %c0_80 = arith.constant 0 : index
      %c1_81 = arith.constant 1 : index
      %c0_82 = arith.constant 0 : index
      %75 = vector.load %arg2[%c2_79, %c0_80, %c1_81, %c0_82] : memref<4x9x9x4xbf16, #tpu.memory_space<vmem>>, vector<1x8x8x4xbf16>
      %76 = vector.shape_cast %75 : vector<1x8x8x4xbf16> to vector<8x8x4xbf16>
      %77 = vector.shape_cast %76 : vector<8x8x4xbf16> to vector<64x4xbf16>
      %c20 = arith.constant 20 : index
      %c0_83 = arith.constant 0 : index
      %78 = vector.load %arg3[%c20, %c0_83] : memref<36x128xbf16, #tpu.memory_space<vmem>>, vector<4x128xbf16>
      %cst_84 = arith.constant dense<0.000000e+00> : vector<64x128xf32>
      %79 = tpu.matmul %77, %78, %cst_84 {dimension_numbers = #tpu.dot_dimension_numbers<[1], [0], [0], [1], [0, 0, 1, 1], [], []>} : vector<64x4xbf16>, vector<4x128xbf16>, vector<64x128xf32> -> vector<64x128xf32>
      %80 = arith.addf %74, %79 : vector<64x128xf32>
      %c0_85 = arith.constant 0 : index
      %c1_86 = arith.constant 1 : index
      %c0_87 = arith.constant 0 : index
      %c0_88 = arith.constant 0 : index
      %81 = vector.load %arg2[%c0_85, %c1_86, %c0_87, %c0_88] : memref<4x9x9x4xbf16, #tpu.memory_space<vmem>>, vector<1x8x8x4xbf16>
      %82 = vector.shape_cast %81 : vector<1x8x8x4xbf16> to vector<8x8x4xbf16>
      %83 = vector.shape_cast %82 : vector<8x8x4xbf16> to vector<64x4xbf16>
      %c24 = arith.constant 24 : index
      %c0_89 = arith.constant 0 : index
      %84 = vector.load %arg3[%c24, %c0_89] : memref<36x128xbf16, #tpu.memory_space<vmem>>, vector<4x128xbf16>
      %cst_90 = arith.constant dense<0.000000e+00> : vector<64x128xf32>
      %85 = tpu.matmul %83, %84, %cst_90 {dimension_numbers = #tpu.dot_dimension_numbers<[1], [0], [0], [1], [0, 0, 1, 1], [], []>} : vector<64x4xbf16>, vector<4x128xbf16>, vector<64x128xf32> -> vector<64x128xf32>
      %86 = arith.addf %80, %85 : vector<64x128xf32>
      %c1_91 = arith.constant 1 : index
      %c1_92 = arith.constant 1 : index
      %c0_93 = arith.constant 0 : index
      %c0_94 = arith.constant 0 : index
      %87 = vector.load %arg2[%c1_91, %c1_92, %c0_93, %c0_94] : memref<4x9x9x4xbf16, #tpu.memory_space<vmem>>, vector<1x8x8x4xbf16>
      %88 = vector.shape_cast %87 : vector<1x8x8x4xbf16> to vector<8x8x4xbf16>
      %89 = vector.shape_cast %88 : vector<8x8x4xbf16> to vector<64x4xbf16>
      %c28 = arith.constant 28 : index
      %c0_95 = arith.constant 0 : index
      %90 = vector.load %arg3[%c28, %c0_95] : memref<36x128xbf16, #tpu.memory_space<vmem>>, vector<4x128xbf16>
      %cst_96 = arith.constant dense<0.000000e+00> : vector<64x128xf32>
      %91 = tpu.matmul %89, %90, %cst_96 {dimension_numbers = #tpu.dot_dimension_numbers<[1], [0], [0], [1], [0, 0, 1, 1], [], []>} : vector<64x4xbf16>, vector<4x128xbf16>, vector<64x128xf32> -> vector<64x128xf32>
      %92 = arith.addf %86, %91 : vector<64x128xf32>
      %c0_97 = arith.constant 0 : index
      %c1_98 = arith.constant 1 : index
      %c1_99 = arith.constant 1 : index
      %c0_100 = arith.constant 0 : index
      %93 = vector.load %arg2[%c0_97, %c1_98, %c1_99, %c0_100] : memref<4x9x9x4xbf16, #tpu.memory_space<vmem>>, vector<1x8x8x4xbf16>
      %94 = vector.shape_cast %93 : vector<1x8x8x4xbf16> to vector<8x8x4xbf16>
      %95 = vector.shape_cast %94 : vector<8x8x4xbf16> to vector<64x4xbf16>
      %c32 = arith.constant 32 : index
      %c0_101 = arith.constant 0 : index
      %96 = vector.load %arg3[%c32, %c0_101] : memref<36x128xbf16, #tpu.memory_space<vmem>>, vector<4x128xbf16>
      %cst_102 = arith.constant dense<0.000000e+00> : vector<64x128xf32>
      %97 = tpu.matmul %95, %96, %cst_102 {dimension_numbers = #tpu.dot_dimension_numbers<[1], [0], [0], [1], [0, 0, 1, 1], [], []>} : vector<64x4xbf16>, vector<4x128xbf16>, vector<64x128xf32> -> vector<64x128xf32>
      %98 = arith.addf %92, %97 : vector<64x128xf32>
      %c0_103 = arith.constant 0 : index
      %c0_104 = arith.constant 0 : index
      %99 = vector.load %arg4[%c0_103, %c0_104] : memref<1x128xf32, #tpu.memory_space<vmem>>, vector<1x128xf32>
      %100 = vector.broadcast %99 : vector<1x128xf32> to vector<64x128xf32>
      %101 = arith.addf %98, %100 : vector<64x128xf32>
      %cst_105 = arith.constant 0.000000e+00 : f32
      %102 = vector.broadcast %cst_105 : f32 to vector<64x128xf32>
      %103 = arith.maximumf %101, %102 : vector<64x128xf32>
      %104 = vector.shape_cast %103 : vector<64x128xf32> to vector<8x8x128xf32>
      %105 = arith.truncf %104 : vector<8x8x128xf32> to vector<8x8x128xbf16>
      %c1_106 = arith.constant 1 : index
      %c1_107 = arith.constant 1 : index
      %c0_108 = arith.constant 0 : index
      %106 = vector.load %arg11[%c1_106, %c1_107, %c0_108] : memref<10x10x128xbf16, #tpu.memory_space<vmem>>, vector<8x8x128xbf16>
      tpu.vector_store %arg11[%c1_106, %c1_107, %c0_108], %105 {strides = array<i32>} : memref<10x10x128xbf16, #tpu.memory_space<vmem>>, vector<8x8x128xbf16>,
    } else {
    }
    %cst = arith.constant 0.000000e+00 : f32
    %3 = vector.broadcast %cst : f32 to vector<64x128xf32>
    %c0 = arith.constant 0 : index
    %c0_1 = arith.constant 0 : index
    %c0_2 = arith.constant 0 : index
    %4 = vector.load %arg11[%c0, %c0_1, %c0_2] : memref<10x10x128xbf16, #tpu.memory_space<vmem>>, vector<8x8x128xbf16>
    %c0_3 = arith.constant 0 : index
    %c1 = arith.constant 1 : index
    %c0_4 = arith.constant 0 : index
    %5 = vector.load %arg11[%c0_3, %c1, %c0_4] : memref<10x10x128xbf16, #tpu.memory_space<vmem>>, vector<8x8x128xbf16>
    %c0_5 = arith.constant 0 : index
    %c2 = arith.constant 2 : index
    %c0_6 = arith.constant 0 : index
    %6 = vector.load %arg11[%c0_5, %c2, %c0_6] : memref<10x10x128xbf16, #tpu.memory_space<vmem>>, vector<8x8x128xbf16>
    %7 = tpu.concatenate %4, %5, %6 in 2 : vector<8x8x128xbf16>, vector<8x8x128xbf16>, vector<8x8x128xbf16> -> vector<8x8x384xbf16>
    %8 = vector.shape_cast %7 : vector<8x8x384xbf16> to vector<64x384xbf16>
    %c0_7 = arith.constant 0 : index
    %c0_8 = arith.constant 0 : index
    %9 = vector.load %arg5[%c0_7, %c0_8] : memref<1152x128xbf16, #tpu.memory_space<vmem>>, vector<384x128xbf16>
    %cst_9 = arith.constant dense<0.000000e+00> : vector<64x128xf32>
    %10 = tpu.matmul %8, %9, %cst_9 {dimension_numbers = #tpu.dot_dimension_numbers<[1], [0], [0], [1], [0, 0, 1, 1], [], []>} : vector<64x384xbf16>, vector<384x128xbf16>, vector<64x128xf32> -> vector<64x128xf32>
    %11 = arith.addf %3, %10 : vector<64x128xf32>
    %c1_10 = arith.constant 1 : index
    %c0_11 = arith.constant 0 : index
    %c0_12 = arith.constant 0 : index
    %12 = vector.load %arg11[%c1_10, %c0_11, %c0_12] : memref<10x10x128xbf16, #tpu.memory_space<vmem>>, vector<8x8x128xbf16>
    %c1_13 = arith.constant 1 : index
    %c1_14 = arith.constant 1 : index
    %c0_15 = arith.constant 0 : index
    %13 = vector.load %arg11[%c1_13, %c1_14, %c0_15] : memref<10x10x128xbf16, #tpu.memory_space<vmem>>, vector<8x8x128xbf16>
    %c1_16 = arith.constant 1 : index
    %c2_17 = arith.constant 2 : index
    %c0_18 = arith.constant 0 : index
    %14 = vector.load %arg11[%c1_16, %c2_17, %c0_18] : memref<10x10x128xbf16, #tpu.memory_space<vmem>>, vector<8x8x128xbf16>
    %15 = tpu.concatenate %12, %13, %14 in 2 : vector<8x8x128xbf16>, vector<8x8x128xbf16>, vector<8x8x128xbf16> -> vector<8x8x384xbf16>
    %16 = vector.shape_cast %15 : vector<8x8x384xbf16> to vector<64x384xbf16>
    %c384 = arith.constant 384 : index
    %c0_19 = arith.constant 0 : index
    %17 = vector.load %arg5[%c384, %c0_19] : memref<1152x128xbf16, #tpu.memory_space<vmem>>, vector<384x128xbf16>
    %cst_20 = arith.constant dense<0.000000e+00> : vector<64x128xf32>
    %18 = tpu.matmul %16, %17, %cst_20 {dimension_numbers = #tpu.dot_dimension_numbers<[1], [0], [0], [1], [0, 0, 1, 1], [], []>} : vector<64x384xbf16>, vector<384x128xbf16>, vector<64x128xf32> -> vector<64x128xf32>
    %19 = arith.addf %11, %18 : vector<64x128xf32>
    %c2_21 = arith.constant 2 : index
    %c0_22 = arith.constant 0 : index
    %c0_23 = arith.constant 0 : index
    %20 = vector.load %arg11[%c2_21, %c0_22, %c0_23] : memref<10x10x128xbf16, #tpu.memory_space<vmem>>, vector<8x8x128xbf16>
    %c2_24 = arith.constant 2 : index
    %c1_25 = arith.constant 1 : index
    %c0_26 = arith.constant 0 : index
    %21 = vector.load %arg11[%c2_24, %c1_25, %c0_26] : memref<10x10x128xbf16, #tpu.memory_space<vmem>>, vector<8x8x128xbf16>
    %c2_27 = arith.constant 2 : index
    %c2_28 = arith.constant 2 : index
    %c0_29 = arith.constant 0 : index
    %22 = vector.load %arg11[%c2_27, %c2_28, %c0_29] : memref<10x10x128xbf16, #tpu.memory_space<vmem>>, vector<8x8x128xbf16>
    %23 = tpu.concatenate %20, %21, %22 in 2 : vector<8x8x128xbf16>, vector<8x8x128xbf16>, vector<8x8x128xbf16> -> vector<8x8x384xbf16>
    %24 = vector.shape_cast %23 : vector<8x8x384xbf16> to vector<64x384xbf16>
    %c768 = arith.constant 768 : index
    %c0_30 = arith.constant 0 : index
    %25 = vector.load %arg5[%c768, %c0_30] : memref<1152x128xbf16, #tpu.memory_space<vmem>>, vector<384x128xbf16>
    %cst_31 = arith.constant dense<0.000000e+00> : vector<64x128xf32>
    %26 = tpu.matmul %24, %25, %cst_31 {dimension_numbers = #tpu.dot_dimension_numbers<[1], [0], [0], [1], [0, 0, 1, 1], [], []>} : vector<64x384xbf16>, vector<384x128xbf16>, vector<64x128xf32> -> vector<64x128xf32>
    %27 = arith.addf %19, %26 : vector<64x128xf32>
    %c0_32 = arith.constant 0 : index
    %c0_33 = arith.constant 0 : index
    %28 = vector.load %arg6[%c0_32, %c0_33] : memref<1x128xf32, #tpu.memory_space<vmem>>, vector<1x128xf32>
    %29 = vector.broadcast %28 : vector<1x128xf32> to vector<64x128xf32>
    %30 = arith.addf %27, %29 : vector<64x128xf32>
    %c0_34 = arith.constant 0 : index
    %c0_35 = arith.constant 0 : index
    %31 = vector.load %arg7[%c0_34, %c0_35] : memref<64x4xbf16, #tpu.memory_space<vmem>>, vector<64x4xbf16>
    %c0_36 = arith.constant 0 : index
    %c0_37 = arith.constant 0 : index
    %32 = vector.load %arg8[%c0_36, %c0_37] : memref<4x128xbf16, #tpu.memory_space<vmem>>, vector<4x128xbf16>
    %cst_38 = arith.constant dense<0.000000e+00> : vector<64x128xf32>
    %33 = tpu.matmul %31, %32, %cst_38 {dimension_numbers = #tpu.dot_dimension_numbers<[1], [0], [0], [1], [0, 0, 1, 1], [], []>} : vector<64x4xbf16>, vector<4x128xbf16>, vector<64x128xf32> -> vector<64x128xf32>
    %34 = arith.addf %30, %33 : vector<64x128xf32>
    %c0_39 = arith.constant 0 : index
    %c0_40 = arith.constant 0 : index
    %35 = vector.load %arg9[%c0_39, %c0_40] : memref<1x128xf32, #tpu.memory_space<vmem>>, vector<1x128xf32>
    %36 = vector.broadcast %35 : vector<1x128xf32> to vector<64x128xf32>
    %37 = arith.addf %34, %36 : vector<64x128xf32>
    %cst_41 = arith.constant 0.000000e+00 : f32
    %38 = vector.broadcast %cst_41 : f32 to vector<64x128xf32>
    %39 = arith.maximumf %37, %38 : vector<64x128xf32>
    %40 = arith.truncf %39 : vector<64x128xf32> to vector<64x128xbf16>
    %c0_42 = arith.constant 0 : index
    %c0_43 = arith.constant 0 : index
    %41 = vector.load %arg10[%c0_42, %c0_43] : memref<64x128xbf16, #tpu.memory_space<vmem>>, vector<64x128xbf16>
    tpu.vector_store %arg10[%c0_42, %c0_43], %40 {strides = array<i32>} : memref<64x128xbf16, #tpu.memory_space<vmem>>, vector<64x128xbf16>,
    return
  }
  func.func @transform_0(%arg0: i32, %arg1: i32) -> (i32, i32, i32, i32) {
    %c0_i32 = arith.constant 0 : i32
    %c0_i32_0 = arith.constant 0 : i32
    %c0_i32_1 = arith.constant 0 : i32
    %c0_i32_2 = arith.constant 0 : i32
    return %arg0, %c0_i32, %c0_i32_0, %c0_i32_1 : i32, i32, i32, i32
  }
  func.func @transform_1(%arg0: i32, %arg1: i32) -> (i32, i32) {
    %c0_i32 = arith.constant 0 : i32
    %c0_i32_0 = arith.constant 0 : i32
    %c0_i32_1 = arith.constant 0 : i32
    return %c0_i32, %c0_i32_0 : i32, i32
  }
  func.func @transform_2(%arg0: i32, %arg1: i32) -> (i32, i32) {
    %c0_i32 = arith.constant 0 : i32
    %c0_i32_0 = arith.constant 0 : i32
    %c0_i32_1 = arith.constant 0 : i32
    return %c0_i32, %c0_i32_0 : i32, i32
  }
  func.func @transform_3(%arg0: i32, %arg1: i32) -> (i32, i32) {
    %c0_i32 = arith.constant 0 : i32
    %c0_i32_0 = arith.constant 0 : i32
    return %c0_i32, %arg1 : i32, i32
  }
  func.func @transform_4(%arg0: i32, %arg1: i32) -> (i32, i32) {
    %c0_i32 = arith.constant 0 : i32
    %c0_i32_0 = arith.constant 0 : i32
    return %c0_i32, %arg1 : i32, i32
  }
  func.func @transform_5(%arg0: i32, %arg1: i32) -> (i32, i32) {
    %c0_i32 = arith.constant 0 : i32
    %c0_i32_0 = arith.constant 0 : i32
    return %arg0, %c0_i32 : i32, i32
  }
  func.func @transform_6(%arg0: i32, %arg1: i32) -> (i32, i32) {
    %c0_i32 = arith.constant 0 : i32
    %c0_i32_0 = arith.constant 0 : i32
    return %c0_i32, %arg1 : i32, i32
  }
  func.func @transform_7(%arg0: i32, %arg1: i32) -> (i32, i32) {
    %c0_i32 = arith.constant 0 : i32
    %c0_i32_0 = arith.constant 0 : i32
    return %c0_i32, %arg1 : i32, i32
  }
  func.func @transform_8(%arg0: i32, %arg1: i32) -> (i32, i32) {
    %c0_i32 = arith.constant 0 : i32
    return %arg0, %arg1 : i32, i32
  }
}

</mosaic_0001>

<bundles_post_ra>
// kernel: tpu_custom_call.1
= control target key start
LH: loop header
LB: loop body
LE: loop exit
PB: predicated region body
PF: predicated region fallthrough
CT: control target
= control target key end

     0   :  { %13 = vsyncpa [#allocation4], 0  ;;  %s5949_s0 = inlined_call_operand.vmem [shape: bf16[8,9,9,4], index: 0, kind: input, shape index: {}]   ;;  %s5950_s1 = inlined_call_operand.vmem [shape: bf16[36,128], index: 1, kind: input, shape index: {}]   ;;  %s5951_s2 = inlined_call_operand.vmem [shape: f32[1,128], index: 2, kind: input, shape index: {}]   ;;  %s5952_s3 = inlined_call_operand.vmem [shape: bf16[1152,128], index: 3, kind: input, shape index: {}]   ;;  %s5953_s4 = inlined_call_operand.vmem [shape: f32[1,128], index: 4, kind: input, shape index: {}]   ;;  %s5954_s5 = inlined_call_operand.vmem [shape: bf16[128,4], index: 5, kind: input, shape index: {}]   ;;  %s5955_s6 = inlined_call_operand.vmem [shape: bf16[4,128], index: 6, kind: input, shape index: {}]   ;;  %s5956_s7 = inlined_call_operand.vmem [shape: f32[1,128], index: 7, kind: input, shape index: {}]   ;;  %s5957_s8 = inlined_call_operand.hbm [shape: bf16[128,128], index: 8, kind: output, shape index: {}]  }
   0x1   :  { %15 = vsyncpa [#allocation4 + $0x1], 0  ;;  %s5055_s27 = smov 0   ;;  %s5057_s28 = smov 0  }
   0x2   :  { %s5059_s29 = smov 0   ;;  %s5061_s30 = smov 0  }
   0x3   :  { %s5063_s9 = smov 0   ;;  %s5065_s10 = smov 0  }
   0x4 LB: > { %s3924_s11 = sadd.s32 4294967295, %s5004_s10   ;;  %s3925_s12 = sadd.s32 4294967294, %s5004_s10   ;;  %s5004_s10 = sphi %s5065_s10, %s21_s10   ;;  %s5000_s9 = sphi %s5063_s9, %s5972_s9   ;;  %s4996_s30 = sphi %s5061_s30, %s5971_s30   ;;  %s4992_s29 = sphi %s5059_s29, %s5970_s29   ;;  %s4988_s28 = sphi %s5057_s28, %s5969_s28   ;;  %s4984_s27 = sphi %s5055_s27, %s5968_s27  }
   0x5   : > { %s33_s13 = sadd.s32 1, %s5000_s9  ;;  %s240_s14 = sadd.s32 1, %s4992_s29 }
   0x6   : > { %p35_p0 = scmp.ge.s32.totalorder %s33_s13, 2  ;;  %p250_p1 = scmp.ne.s32.totalorder %s4992_s29, %s4988_s28 }
   0x7   : > { %p251_p2 = scmp.eq.s32.totalorder %s3924_s11, 1  ;;  %p256_p3 = scmp.ne.s32.totalorder %s4988_s28, %s4984_s27 }
   0x8   : > { %s5974_s13 = smov (%p35_p0, %s33_s13), 0  ;;  %p257_p5 = scmp.eq.s32.totalorder %s3925_s12, 1 }
   0x9   : > { %p5095_p4 = por %p251_p2, %p250_p1  ;;  %s235_s16 = ssub.s32 %s5000_s9, %s5974_s13 }
   0xa   : > { %p3932_p6 = scmp.ge.s32.totalorder %s5004_s10, 1  ;;  %p238_p7 = scmp.eq.s32.totalorder %s235_s16, 0 }
   0xb   : > { %p5102_p8 = por %p257_p5, %p256_p3  ;;  %p326_p9 = scmp.lt.s32.totalorder %s5004_s10, 3 }
   0xc   : > { %s5108_s18 = scalar_select %p238_p7, %s4992_s29, %s240_s14  }
   0xd   : > { %p327_p10 = pnand %p3932_p6, %p326_p9 }
   0xf   : > { %330 = sbr.rel (%p327_p10) target bundleno = 647 (0x287), region = 52 }
  0x14   : > { %v4764_v0 = vld [vmem:[%s5950_s1] ss:$0 sps:$4 sm:$0xcc]   ;;  %vm489_vm0 = vcmask 1041408   ;;  %s3934_s21 = sshll.u32 %s4996_s30, 2  ;;  %vm476_vm1 = vcmask 31744  }
  0x15   : > { %v475_v1 = vrot.slane %v4764_v0, 2  ;;  %p381_p11 = scmp.lt.s32.totalorder %s3934_s21, 7  ;;  %v441_v2 = vld [vmem:[%s5950_s1] sm:$0x3]  ;;  %v789_v3 = vld [vmem:[%s5950_s1 + $0x4] sm:$0x3] }
  0x16   : > { %v4770_v4 = vld [vmem:[%s5950_s1 + $0x4] ss:$0 sps:$4 sm:$0xcc]   ;;  %v1021_v6 = vld [vmem:[%s5950_s1 + $0x8] sm:$0x3]  ;;  %v591_v7 = vsel %vm489_vm0, %v441_v2, 0 }
  0x17   : > { %4695 = vmatprep.subr.msk.bf16.mxu1 %vm489_vm0, %v475_v1  ;;  %4694 = vmatprep.subr.msk.bf16.mxu0 %vm489_vm0, %v475_v1  ;;  %v491_v5 = vsel %vm489_vm0, %v475_v1, 0  ;;  %s5976_s21 = smov (!%p381_p11, %s3934_s21), 7  ;;  %v815_v8 = vsel %vm489_vm0, %v789_v3, 0  ;;  %v923_v9 = vrot.slane %v4770_v4, 2  ;;  %v5139_v10 = vsel %vm489_vm0, %v1021_v6, 0  ;;  %v4792_v46 = vld [vmem:[%s5952_s3 + $0x178] sm:$0xff]  }
  0x18   : > { %4693 = vmatpush3.bf16.msra.mxu1 %v491_v5  ;;  %4521 = vmatpush3.bf16.msra.mxu0 %v491_v5  ;;  %s4705_s16 = smul.u32 72, %s5976_s21  ;;  %v5144_v11 = vld [vmem:[%s5950_s1 + $0x8] ss:$0 sps:$4 sm:$0xcc]   ;;  %vm674_vm2 = vsmask.f32 3328 }
  0x19   : > { %4696 = vmatprep.subr.msk.bf16.mxu1 %vm489_vm0, %v441_v2  ;;  %4697 = vmatprep.subr.msk.bf16.mxu0 %vm489_vm0, %v789_v3  ;;  %vm675_vm3 = vsmask.f32 7440  ;;  %v937_v17 = vsel %vm489_vm0, %v923_v9, 0  ;;  %v1274_v18 = vrot.slane %v5144_v11, 2  ;;  %s3936_s21 = sshll.u32 %s4996_s30, 3  ;;  %vm1968_vm5 = vcmask 1043456  }
  0x1a   : > { %s5136_s22 = scalar_lea.vmem %s5949_s0, %s4705_s16  ;;  %vm5171_vm4 = vmor %vm674_vm2, %vm675_vm3  ;;  %p395_p12 = scmp.lt.s32.totalorder %s3936_s21, 15  ;;  %vm1969_vm6 = vsmask.f32 7938  ;;  %vm1974_vm7 = vcmask 1040384   ;;  %vm1975_vm8 = vsmask.f32 256 }
  0x1b   : > { %v4765_v12 = vld [vmem:[%s5136_s22 + $0x48] ss:$8 sps:$4 sm:$0xff]   ;;  %v4767_v14 = vld [vmem:[%s5136_s22 + $0x58] ss:$8 sps:$4 sm:$0xff]   ;;  %v659_v20 = vld [vmem:[%s5136_s22 + $0x4] sm:$0x1] }
  0x1c   : > { %v4766_v13 = vld [vmem:[%s5136_s22 + $0x68] ss:$8 sps:$4 sm:$0xff]   ;;  %4522 = vmatprep.mubr.msk.bf16.mxu0 %vm476_vm1, %v4765_v12  ;;  %v4768_v15 = vld [vmem:[%s5136_s22 + $0x78] ss:$8 sps:$4 sm:$0xff]   ;;  %v661_v23 = vld [vmem:[%s5136_s22 + $0xc] sm:$0x1] }
  0x1d   : > { %4526 = vmatprep.mubr.msk.bf16.mxu1 %vm476_vm1, %v4766_v13  ;;  %4523 = vmatmul.mubr.msk.bf16.vlgmr.msra.gmra.mxu0 %vm476_vm1, %v4767_v14  ;;  %v4769_v16 = vld [vmem:[%s5136_s22] ss:$8 sps:$4 sm:$0xff]   ;;  %v4771_v22 = vld [vmem:[%s5136_s22 + $0x10] ss:$8 sps:$4 sm:$0xff]   ;;  %v687_v26 = vshll.u32 %v659_v20, 16  ;;  %v701_v29 = vshll.u32 %v661_v23, 16  ;;  %vm5472_vm9 = vmand %vm1968_vm5, %vm1969_vm6 }
  0x1e   : > { %4527 = vmatmul.mubr.msk.bf16.vlgmr.msra.gmra.mxu1 %vm476_vm1, %v4768_v15  ;;  %4541 = vmatpush3.bf16.msra.mxu0 %v815_v8  ;;  %v658_v19 = vld [vmem:[%s5136_s22] sm:$0xf]  ;;  %v660_v21 = vld [vmem:[%s5136_s22 + $0x8] sm:$0xf]  ;;  %v662_v30 = vld [vmem:[%s5136_s22 + $0x10] sm:$0xf] }
  0x1f   : > { %4531 = vmatpush3.bf16.msra.mxu1 %v591_v7  ;;  %4532 = vmatprep.mubr.msk.bf16.mxu1 %vm476_vm1, %v4769_v16  ;;  %v678_v24 = vshrl.u32 %v658_v19, 16  ;;  %v681_v25 = vshll.u32 %v658_v19, 16  ;;  %v692_v27 = vshrl.u32 %v660_v21, 16  ;;  %v695_v28 = vshll.u32 %v660_v21, 16  ;;  %v663_v31 = vld [vmem:[%s5136_s22 + $0x14] sm:$0x1]  ;;  %vm5477_vm10 = vmand %vm1974_vm7, %vm1975_vm8 }
  0x20   : > { %4698 = vmatprep.subr.msk.bf16.mxu1 %vm489_vm0, %v923_v9  ;;  %4699 = vmatprep.subr.msk.bf16.mxu0 %vm489_vm0, %v1021_v6  ;;  %v689_v34 = vrot.slane %v687_v26, 5  ;;  %v664_v36 = vld [vmem:[%s5136_s22 + $0x18] sm:$0xf]  ;;  %v703_v38 = vrot.slane %v701_v29, 5  ;;  %v665_v39 = vld [vmem:[%s5136_s22 + $0x1c] sm:$0x1] }
  0x21   : > { %v680_v32 = vrot.slane %v678_v24, 4  ;;  %v683_v33 = vrot.slane %v681_v25, 5  ;;  %v694_v35 = vrot.slane %v692_v27, 4  ;;  %v697_v37 = vrot.slane %v695_v28, 5  ;;  %v4772_v55 = vld [vmem:[%s5136_s22 + $0x20] ss:$8 sps:$4 sm:$0xff]  }
  0x22   : > { %v706_v40 = vshrl.u32 %v662_v30, 16  ;;  %v709_v41 = vshll.u32 %v662_v30, 16  ;;  %v715_v43 = vshll.u32 %v663_v31, 16  ;;  %v720_v44 = vshrl.u32 %v664_v36, 16  ;;  %v4773_v61 = vld [vmem:[%s5136_s22 + $0x30] ss:$8 sps:$4 sm:$0xff]  }
  0x23   : > { %v684_v42 = vor.u32 %v683_v33, %v680_v32  ;;  %v723_v45 = vshll.u32 %v664_v36, 16  ;;  %v698_v47 = vor.u32 %v697_v37, %v694_v35  ;;  %v729_v50 = vshll.u32 %v665_v39, 16  ;;  %v666_v62 = vld [vmem:[%s5136_s22 + $0x20] sm:$0xf]  ;;  %v667_v63 = vld [vmem:[%s5136_s22 + $0x24] sm:$0x1] }
  0x24   : > { %v708_v48 = vrot.slane %v706_v40, 4  ;;  %v711_v49 = vrot.slane %v709_v41, 5  ;;  %v717_v52 = vrot.slane %v715_v43, 5  ;;  %v722_v53 = vrot.slane %v720_v44, 4  ;;  %v668_v2 = vld [vmem:[%s5136_s22 + $0x28] sm:$0xf] }
  0x25   : > { %v685_v51 = vrot.slane %v684_v42, 4  ;;  %v725_v54 = vrot.slane %v723_v45, 5  ;;  %v699_v56 = vrot.slane %v698_v47, 4  ;;  %v731_v58 = vrot.slane %v729_v50, 5  ;;  %v669_v3 = vld [vmem:[%s5136_s22 + $0x2c] sm:$0x1] }
  0x26   : > { %4533 = vmatmul.mubr.msk.bf16.vlgmr.msra.gmra.mxu1 %vm476_vm1, %v4771_v22  ;;  %v712_v57 = vor.u32 %v711_v49, %v708_v48  ;;  %v734_v4 = vshrl.u32 %v666_v62, 16  ;;  %v737_v7 = vshll.u32 %v666_v62, 16  ;;  %v743_v8 = vshll.u32 %v667_v63, 16  ;;  %v670_v9 = vld [vmem:[%s5136_s22 + $0x30] sm:$0xf]  ;;  %s5978_s21 = smov (!%p395_p12, %s3936_s21), 15 }
  0x27   : > { %4551 = vmatpush3.bf16.msra.mxu1 %v937_v17  ;;  %v690_v59 = vsel %vm5171_vm4, %v685_v51, %v689_v34  ;;  %v726_v60 = vor.u32 %v725_v54, %v722_v53  ;;  %4536 = vmatprep.mubr.msk.bf16.mxu1 %vm476_vm1, %v4772_v55  ;;  %v704_v0 = vsel %vm5171_vm4, %v699_v56, %v703_v38  ;;  %v748_v14 = vshrl.u32 %v668_v2, 16  ;;  %v671_v16 = vld [vmem:[%s5136_s22 + $0x34] sm:$0x1]  ;;  %v672_v22 = vld [vmem:[%s5136_s22 + $0x38] sm:$0xf]  ;;  %s3937_s23 = sshll.u32 %s5978_s21, 2 }
  0x28   : > { %4700 = vmatprep.subr.msk.bf16.mxu1 %vm489_vm0, %v1274_v18  ;;  %v713_v1 = vrot.slane %v712_v57, 4  ;;  %v3963_v5 = vcombine.low %v690_v59, %v704_v0  ;;  %v736_v13 = vrot.slane %v734_v4, 4  ;;  %v751_v15 = vshll.u32 %v668_v2, 16  ;;  %v1372_v23 = vld [vmem:[%s5950_s1 + $0xc] sm:$0x3]  ;;  %s5451_s26 = scalar_lea.vmem %s5954_s5, %s3937_s23  ;;  %s377_s11 = sand.u32 1, %s4988_s28  }
  0x29   : > { %v727_v6 = vrot.slane %v726_v60, 4  ;;  %v739_v19 = vrot.slane %v737_v7, 5  ;;  %v745_v20 = vrot.slane %v743_v8, 5  ;;  %v757_v21 = vshll.u32 %v669_v3, 16  ;;  %v673_v27 = vld [vmem:[%s5136_s22 + $0x3c] sm:$0x1] }
  0x2a   : > { %v718_v12 = vsel %vm5171_vm4, %v713_v1, %v717_v52  ;;  %4542 = vmatprep.mubr.msk.bf16.mxu0 %vm476_vm1, %v3963_v5  ;;  %v750_v25 = vrot.slane %v748_v14, 4  ;;  %v753_v26 = vrot.slane %v751_v15, 5  ;;  %v762_v28 = vshrl.u32 %v670_v9, 16  ;;  %v5206_v33 = vld [vmem:[%s5950_s1 + $0xc] ss:$0 sps:$4 sm:$0xcc]  }
  0x2b   : > { %v732_v17 = vsel %vm5171_vm4, %v727_v6, %v731_v58  ;;  %v740_v29 = vor.u32 %v739_v19, %v736_v13  ;;  %v759_v30 = vrot.slane %v757_v21, 5  ;;  %v765_v31 = vshll.u32 %v670_v9, 16  ;;  %v4774_v41 = vld [vmem:[%s5136_s22 + $0x90] ss:$8 sps:$4 sm:$0xff]   ;;  %v4776_v49 = vld [vmem:[%s5136_s22 + $0xa0] ss:$8 sps:$4 sm:$0xff]  }
  0x2c   : > { %v3964_v24 = vcombine.low %v718_v12, %v732_v17  ;;  %v771_v32 = vshll.u32 %v671_v16, 16  ;;  %v754_v34 = vor.u32 %v753_v26, %v750_v25  ;;  %v764_v35 = vrot.slane %v762_v28, 4  ;;  %v4779_v11 = vld [vmem:[%s5136_s22 + $0xb0] ss:$8 sps:$4 sm:$0xff]   ;;  %v4005_v63 = vld [vmem:[%s5136_s22 + $0x94] sm:$0x1] }
  0x2d   : > { %v776_v36 = vshrl.u32 %v672_v22, 16  ;;  %v779_v37 = vshll.u32 %v672_v22, 16  ;;  %v741_v38 = vrot.slane %v740_v29, 4  ;;  %v767_v39 = vrot.slane %v765_v31, 5  ;;  %v4777_v58 = vld [vmem:[%s5136_s22 + $0xd8] ss:$8 sps:$4 sm:$0xff]  }
  0x2e   : > { %4537 = vmatmul.mubr.msk.bf16.gmra.mxu1 %vm476_vm1, %v4773_v61  ;;  %4543 = vmatmul.mubr.msk.bf16.vlgmr.msra.gmra.mxu0 %vm476_vm1, %v3964_v24  ;;  %v785_v40 = vshll.u32 %v673_v27, 16  ;;  %v755_v42 = vrot.slane %v754_v34, 4  ;;  %v773_v48 = vrot.slane %v771_v32, 5  ;;  %v1288_v52 = vsel %vm489_vm0, %v1274_v18, 0  ;;  %v4780_v61 = vld [vmem:[%s5136_s22 + $0xc0] ss:$8 sps:$4 sm:$0xff]  }
  0x2f   : > { %4561 = vmatpush3.bf16.msra.mxu0 %v5139_v10  ;;  %v778_v43 = vrot.slane %v776_v36, 4  ;;  %v781_v44 = vrot.slane %v779_v37, 5  ;;  %v746_v45 = vsel %vm5171_vm4, %v741_v38, %v745_v20  ;;  %v768_v47 = vor.u32 %v767_v39, %v764_v35  ;;  %4552 = vmatprep.mubr.msk.bf16.mxu1 %vm476_vm1, %v4774_v41  ;;  %v4004_v62 = vld [vmem:[%s5136_s22 + $0x90] sm:$0xf]  ;;  %v4006_v0 = vld [vmem:[%s5136_s22 + $0x98] sm:$0xf] }
  0x30   : > { %4701 = vmatprep.subr.msk.bf16.mxu0 %vm489_vm0, %v1372_v23  ;;  %v760_v10 = vsel %vm5171_vm4, %v755_v42, %v759_v30  ;;  %v787_v51 = vrot.slane %v785_v40, 5  ;;  %v1514_v55 = vrot.slane %v5206_v33, 2  ;;  %v1406_v60 = vsel %vm489_vm0, %v1372_v23, 0  ;;  %v4007_v1 = vld [vmem:[%s5136_s22 + $0x9c] sm:$0x1]  ;;  %s3933_s12 = sshll.u32 %s377_s11, 5 }
  0x31   : > { %v782_v50 = vor.u32 %v781_v44, %v778_v43  ;;  %v3965_v53 = vcombine.low %v746_v45, %v760_v10  ;;  %v769_v54 = vrot.slane %v768_v47, 4  ;;  %v1147_v2 = vshrl.u32 %v4004_v62, 16  ;;  %v4008_v6 = vld [vmem:[%s5136_s22 + $0xa0] sm:$0xf]  ;;  %v4778_v7 = vld [vmem:[%s5136_s22 + $0xe8] ss:$8 sps:$4 sm:$0xff]  }
  0x32   : > { %v1150_v3 = vshll.u32 %v4004_v62, 16  ;;  %v1156_v4 = vshll.u32 %v4005_v63, 16  ;;  %v1161_v5 = vshrl.u32 %v4006_v0, 16  ;;  %v1164_v8 = vshll.u32 %v4006_v0, 16  ;;  %v4009_v12 = vld [vmem:[%s5136_s22 + $0xa4] sm:$0x1] }
  0x33   : > { %v783_v56 = vrot.slane %v782_v50, 4  ;;  %4546 = vmatprep.mubr.msk.bf16.mxu0 %vm476_vm1, %v3965_v53  ;;  %v774_v57 = vsel %vm5171_vm4, %v769_v54, %v773_v48  ;;  %v1170_v9 = vshll.u32 %v4007_v1, 16  ;;  %v4010_v13 = vld [vmem:[%s5136_s22 + $0xa8] sm:$0xf]  ;;  %v4781_v14 = vld [vmem:[%s5136_s22 + $0xf8] ss:$8 sps:$4 sm:$0xff]  }
  0x34   : > { %v1149_v15 = vrot.slane %v1147_v2, 4  ;;  %v1152_v16 = vrot.slane %v1150_v3, 5  ;;  %v1158_v17 = vrot.slane %v1156_v4, 5  ;;  %v1163_v19 = vrot.slane %v1161_v5, 4  ;;  %v4011_v20 = vld [vmem:[%s5136_s22 + $0xac] sm:$0x1] }
  0x35   : > { %v788_v18 = vsel %vm5171_vm4, %v783_v56, %v787_v51  ;;  %v1166_v21 = vrot.slane %v1164_v8, 5  ;;  %v1172_v22 = vrot.slane %v1170_v9, 5  ;;  %v1175_v23 = vshrl.u32 %v4008_v6, 16  ;;  %v5250_v33 = vld [vmem:[%s5950_s1 + $0x10] sm:$0x3]  ;;  %s5877_s14 = scalar_lea.vmem [#allocation3], %s3933_s12 }
  0x36   : > { %4553 = vmatmul.mubr.msk.bf16.vlgmr.msra.gmra.mxu1 %vm476_vm1, %v4776_v49  ;;  %v3966_v59 = vcombine.low %v774_v57, %v788_v18  ;;  %v1178_v24 = vshll.u32 %v4008_v6, 16  ;;  %v1153_v25 = vor.u32 %v1152_v16, %v1149_v15  ;;  %v1184_v26 = vshll.u32 %v4009_v12, 16  ;;  %v4012_v44 = vld [vmem:[%s5136_s22 + $0xb0] sm:$0xf]  ;;  %v4013_v45 = vld [vmem:[%s5136_s22 + $0xb4] sm:$0x1] }
  0x37   : > { %4571 = vmatpush3.bf16.msra.mxu1 %v1288_v52  ;;  %4556 = vmatprep.mubr.msk.bf16.mxu1 %vm476_vm1, %v4779_v11  ;;  %v1189_v27 = vshrl.u32 %v4010_v13, 16  ;;  %v1192_v28 = vshll.u32 %v4010_v13, 16  ;;  %v1167_v29 = vor.u32 %v1166_v21, %v1163_v19  ;;  %v1177_v30 = vrot.slane %v1175_v23, 4  ;;  %v4014_v47 = vld [vmem:[%s5136_s22 + $0xb8] sm:$0xf]  ;;  %s3786_s16 = sshll.u32 %s5877_s14, 4  ;;  %s5899_s16 = int_to_ptr.vmem [resolvable:$true] %s3786_s16 }
  0x38   : > { %4702 = vmatprep.subr.msk.bf16.mxu1 %vm489_vm0, %v1514_v55  ;;  %4547 = vmatmul.mubr.msk.bf16.gmra.mxu0 %vm476_vm1, %v3966_v59  ;;  %v1180_v31 = vrot.slane %v1178_v24, 5  ;;  %v1198_v32 = vshll.u32 %v4011_v20, 16  ;;  %v1154_v34 = vrot.slane %v1153_v25, 4  ;;  %v1528_v37 = vsel %vm489_vm0, %v1514_v55, 0  ;;  %v4782_v48 = vld [vmem:[%s5136_s22 + $0x108] ss:$8 sps:$4 sm:$0xff]  }
  0x39   : > { %4562 = vmatprep.mubr.msk.bf16.mxu0 %vm476_vm1, %v4777_v58  ;;  %v1191_v35 = vrot.slane %v1189_v27, 4  ;;  %v1194_v36 = vrot.slane %v1192_v28, 5  ;;  %v1168_v38 = vrot.slane %v1167_v29, 4  ;;  %v1186_v40 = vrot.slane %v1184_v26, 5  ;;  %v4015_v50 = vld [vmem:[%s5136_s22 + $0xbc] sm:$0x1] }
  0x3a   : > { %v1181_v39 = vor.u32 %v1180_v31, %v1177_v30  ;;  %v1200_v41 = vrot.slane %v1198_v32, 5  ;;  %v1159_v42 = vsel %vm5171_vm4, %v1154_v34, %v1158_v17  ;;  %v1203_v51 = vshrl.u32 %v4012_v44, 16  ;;  %v4784_v55 = vld [vmem:[%s5136_s22 + $0x8] ss:$8 sps:$4 sm:$0xff]   ;;  %v4016_v11 = vld [vmem:[%s5136_s22 + $0xc0] sm:$0xf] }
  0x3b   : > { %v1195_v43 = vor.u32 %v1194_v36, %v1191_v35  ;;  %v1173_v49 = vsel %vm5171_vm4, %v1168_v38, %v1172_v22  ;;  %v1206_v52 = vshll.u32 %v4012_v44, 16  ;;  %v1212_v56 = vshll.u32 %v4013_v45, 16  ;;  %v4018_v2 = vld [vmem:[%s5136_s22 + $0xc8] sm:$0xf]  ;;  %v4019_v6 = vld [vmem:[%s5136_s22 + $0xcc] sm:$0x1] }
  0x3c   : > { %v1182_v10 = vrot.slane %v1181_v39, 4  ;;  %v4020_v53 = vcombine.low %v1159_v42, %v1173_v49  ;;  %v1217_v57 = vshrl.u32 %v4014_v47, 16  ;;  %v1205_v58 = vrot.slane %v1203_v51, 4  ;;  %v4785_v22 = vld [vmem:[%s5136_s22 + $0x18] ss:$8 sps:$4 sm:$0xff]   ;;  %s4290_s19 = sshll.u32 %s4996_s30, 9 }
  0x3d   : > { %v1196_v54 = vrot.slane %v1195_v43, 4  ;;  %v1208_v59 = vrot.slane %v1206_v52, 5  ;;  %v1214_v63 = vrot.slane %v1212_v56, 5  ;;  %v1226_v1 = vshll.u32 %v4015_v50, 16  ;;  %v4786_v35 = vld [vmem:[%s5136_s22 + $0x28] ss:$8 sps:$4 sm:$0xff]   ;;  %s5897_s21 = scalar_lea.hbm %s5957_s8, %s4290_s19 }
  0x3e   : > { %4557 = vmatmul.mubr.msk.bf16.gmra.mxu1 %vm476_vm1, %v4780_v61  ;;  %v1187_v18 = vsel %vm5171_vm4, %v1182_v10, %v1186_v40  ;;  %v4017_v61 = vld [vmem:[%s5136_s22 + $0xc4] sm:$0x1]  ;;  %v1219_v0 = vrot.slane %v1217_v57, 4  ;;  %v1234_v9 = vshll.u32 %v4016_v11, 16  ;;  %v1245_v13 = vshrl.u32 %v4018_v2, 16  ;;  %s4928_s23 = scalar_lea.vmem %s5899_s16, 512 }
  0x3f   : > { %4572 = vmatprep.mubr.msk.bf16.mxu1 %vm476_vm1, %v4020_v53  ;;  %v1201_v62 = vsel %vm5171_vm4, %v1196_v54, %v1200_v41  ;;  %v1209_v4 = vor.u32 %v1208_v59, %v1205_v58  ;;  %v1228_v8 = vrot.slane %v1226_v1, 5  ;;  %v1240_v12 = vshll.u32 %v4017_v61, 16  ;;  %v4062_v36 = vld [vmem:[%s5136_s22 + $0x8] sm:$0xf]  ;;  %v4788_v38 = vld [vmem:[%s5136_s22 + $0x50] ss:$8 sps:$4 sm:$0xff]   ;;  %p4929_p13 = scmp.ne.s32.totalorder %s5899_s16, %s4928_s23 }
  0x40   : > { %4563 = vmatmul.mubr.msk.bf16.vlgmr.msra.gmra.mxu0 %vm476_vm1, %v4778_v7  ;;  %v4021_v3 = vcombine.low %v1187_v18, %v1201_v62  ;;  %v1231_v7 = vshrl.u32 %v4016_v11, 16  ;;  %v1248_v17 = vshll.u32 %v4018_v2, 16  ;;  %v1236_v19 = vrot.slane %v1234_v9, 5  ;;  %v4063_v39 = vld [vmem:[%s5136_s22 + $0xc] sm:$0x1]  ;;  %s5007_s30 = smov [#allocation3]  }
  0x41   : > { %4581 = vmatpush3.bf16.msra.mxu0 %v1406_v60  ;;  %4566 = vmatprep.mubr.msk.bf16.mxu0 %vm476_vm1, %v4781_v14  ;;  %v1220_v60 = vshll.u32 %v4014_v47, 16  ;;  %v1210_v14 = vrot.slane %v1209_v4, 4  ;;  %v1247_v20 = vrot.slane %v1245_v13, 4  ;;  %v1254_v21 = vshll.u32 %v4019_v6, 16  ;;  %v4064_v40 = vld [vmem:[%s5136_s22 + $0x10] sm:$0xf]  ;;  %p4930_p0 = pnand %p4929_p13, %p5095_p4 }
  0x42   : > { %4703 = vmatprep.subr.msk.bf16.mxu0 %vm489_vm0, %v5250_v33  ;;  %v1233_v16 = vrot.slane %v1231_v7, 4  ;;  %v1250_v25 = vrot.slane %v1248_v17, 5  ;;  %v1242_v27 = vrot.slane %v1240_v12, 5  ;;  %v1757_v31 = vsel %vm489_vm0, %v5250_v33, 0  ;;  %v4065_v43 = vld [vmem:[%s5136_s22 + $0x14] sm:$0x1] }
  0x43   : > { %v1222_v5 = vrot.slane %v1220_v60, 5  ;;  %v1215_v23 = vsel %vm5171_vm4, %v1210_v14, %v1214_v63  ;;  %v1256_v30 = vrot.slane %v1254_v21, 5  ;;  %v1620_v41 = vshrl.u32 %v4062_v36, 16  ;;  %v4066_v50 = vld [vmem:[%s5136_s22 + $0x18] sm:$0xf]  ;;  %p4931_p1 = pneg %p4930_p0  ;;  %s4932_s24 = sshll.u32 %s5007_s30, 4  ;;  %s4933_s24 = int_to_ptr.vmem [resolvable:$false] %s4932_s24 }
  0x44   : > { %v1237_v26 = vor.u32 %v1236_v19, %v1233_v16  ;;  %v1251_v29 = vor.u32 %v1250_v25, %v1247_v20  ;;  %v1623_v44 = vshll.u32 %v4062_v36, 16  ;;  %v1629_v33 = vshll.u32 %v4063_v39, 16  ;;  %v4787_v56 = vld [vmem:[%s5136_s22 + $0x38] ss:$8 sps:$4 sm:$0xff]   ;;  %v4069_v58 = vld [vmem:[%s5136_s22 + $0x24] sm:$0x1]  ;;  %p4935_p2 = scmp.lt.s32.totalorder %s5899_s16, %s4933_s24 }
  0x45   : > { %v1223_v15 = vor.u32 %v1222_v5, %v1219_v0  ;;  %v1634_v45 = vshrl.u32 %v4064_v40, 16  ;;  %v1637_v49 = vshll.u32 %v4064_v40, 16  ;;  %v1643_v10 = vshll.u32 %v4065_v43, 16  ;;  %v4068_v18 = vld [vmem:[%s5136_s22 + $0x20] sm:$0xf]  ;;  %s4934_s25 = scalar_lea.vmem %s4933_s24, 1024 }
  0x46   : > { %4573 = vmatmul.mubr.msk.bf16.vlgmr.msra.gmra.mxu1 %vm476_vm1, %v4021_v3  ;;  %v1238_v34 = vrot.slane %v1237_v26, 4  ;;  %v1625_v52 = vrot.slane %v1623_v44, 5  ;;  %v1631_v53 = vrot.slane %v1629_v33, 5  ;;  %v1648_v60 = vshrl.u32 %v4066_v50, 16  ;;  %v4789_v3 = vld [vmem:[%s5136_s22 + $0x60] ss:$8 sps:$4 sm:$0xff]   ;;  %p4936_p3 = scmp.lt.s32.totalorder %s4934_s25, %s4928_s23 }
  0x47   : > { %4591 = vmatpush3.bf16.msra.mxu1 %v1528_v37  ;;  %v1224_v24 = vrot.slane %v1223_v15, 4  ;;  %v1252_v37 = vrot.slane %v1251_v29, 4  ;;  %v1636_v54 = vrot.slane %v1634_v45, 4  ;;  %v1639_v57 = vrot.slane %v1637_v49, 5  ;;  %v4790_v12 = vld [vmem:[%s5136_s22 + $0x70] ss:$8 sps:$4 sm:$0xff]  }
  0x48   : > { %4567 = vmatmul.mubr.msk.bf16.gmra.mxu0 %vm476_vm1, %v4782_v48  ;;  %v1243_v42 = vsel %vm5171_vm4, %v1238_v34, %v1242_v27  ;;  %v1622_v48 = vrot.slane %v1620_v41, 4  ;;  %v1645_v11 = vrot.slane %v1643_v10, 5  ;;  %v1651_v61 = vshll.u32 %v4066_v50, 16  ;;  %v4070_v17 = vld [vmem:[%s5136_s22 + $0x28] sm:$0xf]  ;;  %p4937_p5 = por %p4936_p3, %p4935_p2 }
  0x49   : > { %4582 = vmatprep.mubr.msk.bf16.mxu0 %vm476_vm1, %v4784_v55  ;;  %v1229_v28 = vsel %vm5171_vm4, %v1224_v24, %v1228_v8  ;;  %v1257_v47 = vsel %vm5171_vm4, %v1252_v37, %v1256_v30  ;;  %v4067_v55 = vld [vmem:[%s5136_s22 + $0x1c] sm:$0x1]  ;;  %v1640_v63 = vor.u32 %v1639_v57, %v1636_v54  ;;  %v1662_v0 = vshrl.u32 %v4068_v18, 16  ;;  %v4071_v21 = vld [vmem:[%s5136_s22 + $0x2c] sm:$0x1] }
  0x4a   : > { %v4022_v32 = vcombine.low %v1215_v23, %v1229_v28  ;;  %v4023_v51 = vcombine.low %v1243_v42, %v1257_v47  ;;  %v1626_v59 = vor.u32 %v1625_v52, %v1622_v48  ;;  %v1657_v62 = vshll.u32 %v4067_v55, 16  ;;  %v4073_v23 = vld [vmem:[%s5136_s22 + $0x34] sm:$0x1]  ;;  %v4074_v28 = vld [vmem:[%s5136_s22 + $0x38] sm:$0xf]  ;;  %p4938_p6 = pnand %p4937_p5, %p4931_p1 }
  0x4b   : > { %v1665_v1 = vshll.u32 %v4068_v18, 16  ;;  %v1671_v2 = vshll.u32 %v4069_v58, 16  ;;  %v1650_v5 = vrot.slane %v1648_v60, 4  ;;  %v1653_v6 = vrot.slane %v1651_v61, 5  ;;  %v4075_v34 = vld [vmem:[%s5136_s22 + $0x3c] sm:$0x1] }
  0x4c   : > { %4576 = vmatprep.mubr.msk.bf16.mxu1 %vm476_vm1, %v4022_v32  ;;  %v1627_v4 = vrot.slane %v1626_v59, 4  ;;  %v1641_v7 = vrot.slane %v1640_v63, 4  ;;  %v1664_v8 = vrot.slane %v1662_v0, 4  ;;  %v1659_v15 = vrot.slane %v1657_v62, 5  ;;  %v4076_v39 = vld [vmem:[%s5136_s22 + $0x40] sm:$0xf] }
  0x4d   : > { %v1667_v9 = vrot.slane %v1665_v1, 5  ;;  %v1654_v14 = vor.u32 %v1653_v6, %v1650_v5  ;;  %v1673_v16 = vrot.slane %v1671_v2, 5  ;;  %v1676_v26 = vshrl.u32 %v4070_v17, 16  ;;  %v4077_v44 = vld [vmem:[%s5136_s22 + $0x44] sm:$0x1] }
  0x4e   : > { %4577 = vmatmul.mubr.msk.bf16.gmra.mxu1 %vm476_vm1, %v4023_v51  ;;  %v1632_v13 = vsel %vm5171_vm4, %v1627_v4, %v1631_v53  ;;  %v1646_v19 = vsel %vm5171_vm4, %v1641_v7, %v1645_v11  ;;  %v1679_v27 = vshll.u32 %v4070_v17, 16  ;;  %v1685_v30 = vshll.u32 %v4071_v21, 16  ;;  %v4791_v45 = vld [vmem:[%s5136_s22 + $0x80] ss:$8 sps:$4 sm:$0xff]  }
  0x4f   : > { %4592 = vmatprep.mubr.msk.bf16.mxu1 %vm476_vm1, %v4788_v38  ;;  %v1668_v20 = vor.u32 %v1667_v9, %v1664_v8  ;;  %v4078_v24 = vcombine.low %v1632_v13, %v1646_v19  ;;  %v1655_v25 = vrot.slane %v1654_v14, 4  ;;  %v1678_v36 = vrot.slane %v1676_v26, 4  ;;  %v4794_v8 = vld [vmem:[%s5952_s3 + $0x170] sm:$0xff]   ;;  %v4793_v9 = vld [vmem:[%s5952_s3 + $0x138] sm:$0xff]   ;;  %v4797_v13 = vld [vmem:[%s5952_s3 + $0x168] sm:$0xff]  }
  0x50   : > { %4583 = vmatmul.mubr.msk.bf16.vlgmr.msra.gmra.mxu0 %vm476_vm1, %v4785_v22  ;;  %v4072_v22 = vld [vmem:[%s5136_s22 + $0x30] sm:$0xf]  ;;  %v1681_v37 = vrot.slane %v1679_v27, 5  ;;  %v1699_v38 = vshll.u32 %v4073_v23, 16  ;;  %v1687_v41 = vrot.slane %v1685_v30, 5  ;;  %v1704_v49 = vshrl.u32 %v4074_v28, 16  ;;  %4359 = vmatprep.subr.bf16.mxu1 %v4793_v9 }
  0x51   : > { %4601 = vmatpush3.bf16.msra.mxu0 %v1757_v31  ;;  %4586 = vmatprep.mubr.msk.bf16.mxu0 %vm476_vm1, %v4786_v35  ;;  %v1669_v29 = vrot.slane %v1668_v20, 4  ;;  %v1690_v31 = vshrl.u32 %v4072_v22, 16  ;;  %v1693_v32 = vshll.u32 %v4072_v22, 16  ;;  %v1660_v35 = vsel %vm5171_vm4, %v1655_v25, %v1659_v15  ;;  %v4796_v14 = vld [vmem:[%s5952_s3 + $0x130] sm:$0xff]   ;;  %v4799_v17 = vld [vmem:[%s5952_s3 + $0x128] sm:$0xff]   ;;  %v4803_v20 = vld [vmem:[%s5952_s3 + $0x158] sm:$0xff]  }
  0x52   : > { %v1682_v47 = vor.u32 %v1681_v37, %v1678_v36  ;;  %v1701_v48 = vrot.slane %v1699_v38, 5  ;;  %v1707_v50 = vshll.u32 %v4074_v28, 16  ;;  %v1713_v51 = vshll.u32 %v4075_v34, 16  ;;  %4610 = vmatprep.subr.bf16.mxu0 %v4792_v46  ;;  %v4798_v15 = vld [vmem:[%s5952_s3 + $0xf0] sm:$0xff]   ;;  %v4801_v19 = vld [vmem:[%s5952_s3 + $0xe8] sm:$0xff]   ;;  %v4802_v21 = vld [vmem:[%s5952_s3 + $0x120] sm:$0xff]  }
  0x53   : > { %v1674_v40 = vsel %vm5171_vm4, %v1669_v29, %v1673_v16  ;;  %v1692_v42 = vrot.slane %v1690_v31, 4  ;;  %v1695_v43 = vrot.slane %v1693_v32, 5  ;;  %v1718_v52 = vshrl.u32 %v4076_v39, 16  ;;  %v4800_v16 = vld [vmem:[%s5952_s3 + $0x160] sm:$0xff]   ;;  %v4806_v23 = vld [vmem:[%s5952_s3 + $0x150] sm:$0xff]   ;;  %v4807_v25 = vld [vmem:[%s5952_s3 + $0xd8] sm:$0xff]  }
  0x54   : > { %v4079_v33 = vcombine.low %v1660_v35, %v1674_v40  ;;  %v1683_v53 = vrot.slane %v1682_v47, 4  ;;  %v1706_v54 = vrot.slane %v1704_v49, 4  ;;  %v1721_v55 = vshll.u32 %v4076_v39, 16  ;;  %v4804_v22 = vld [vmem:[%s5952_s3 + $0xe0] sm:$0xff]   ;;  %v4809_v26 = vld [vmem:[%s5952_s3 + $0x148] sm:$0xff]   ;;  %v4808_v27 = vld [vmem:[%s5952_s3 + $0x110] sm:$0xff]  }
  0x55   : > { %v1696_v10 = vor.u32 %v1695_v43, %v1692_v42  ;;  %v1709_v11 = vrot.slane %v1707_v50, 5  ;;  %v1715_v18 = vrot.slane %v1713_v51, 5  ;;  %v1720_v58 = vrot.slane %v1718_v52, 4  ;;  %v4810_v28 = vld [vmem:[%s5952_s3 + $0xd0] sm:$0xff]   ;;  %v4811_v29 = vld [vmem:[%s5952_s3 + $0x108] sm:$0xff]   ;;  %v4812_v30 = vld [vmem:[%s5952_s3 + $0x140] sm:$0xff]  }
  0x56   : > { %4593 = vmatmul.mubr.msk.bf16.vlgmr.msra.gmra.mxu1 %vm476_vm1, %v4789_v3  ;;  %v1688_v59 = vsel %vm5171_vm4, %v1683_v53, %v1687_v41  ;;  %v1723_v60 = vrot.slane %v1721_v55, 5  ;;  %v5006_v7 = vmov 0   ;;  %v4813_v31 = vld [vmem:[%s5952_s3 + $0xc8] sm:$0xff]   ;;  %v4814_v32 = vld [vmem:[%s5952_s3 + $0x100] sm:$0xff]   ;;  %v5413_v34 = vld [vmem:[%s5952_s3 + $0xb8] sm:$0xff]  }
  0x57   : > { %4596 = vmatprep.mubr.msk.bf16.mxu1 %vm476_vm1, %v4790_v12  ;;  %v1697_v57 = vrot.slane %v1696_v10, 4  ;;  %v1710_v63 = vor.u32 %v1709_v11, %v1706_v54  ;;  %419 = vst [vmem:[#allocation2 + $0x18] sm:$0xf] %v5006_v7  ;;  %420 = vst [vmem:[#allocation2 + $0x1c] sm:$0x1] %v5006_v7  ;;  %v4795_v12 = vld [vmem:[%s5952_s3 + $0xf8] sm:$0xff]  }
  0x58   : > { %4587 = vmatmul.mubr.msk.bf16.gmra.mxu0 %vm476_vm1, %v4787_v56  ;;  %v1727_v56 = vshll.u32 %v4077_v44, 16  ;;  %v1724_v1 = vor.u32 %v1723_v60, %v1720_v58  ;;  %413 = vst [vmem:[#allocation2] sm:$0xf] %v5006_v7  ;;  %414 = vst [vmem:[#allocation2 + $0x4] sm:$0x1] %v5006_v7  ;;  %4360 = vmatpush3.bf16.msra.mxu1 %v4795_v12  ;;  %v4821_v35 = vld [vmem:[%s5952_s3 + $0xc0] sm:$0xff]  }
  0x59   : > { %4602 = vmatprep.mubr.msk.bf16.mxu0 %vm476_vm1, %v4078_v24  ;;  %v1702_v62 = vsel %vm5171_vm4, %v1697_v57, %v1701_v48  ;;  %v1711_v2 = vrot.slane %v1710_v63, 4  ;;  %415 = vst [vmem:[#allocation2 + $0x8] sm:$0xf] %v5006_v7  ;;  %416 = vst [vmem:[#allocation2 + $0xc] sm:$0x1] %v5006_v7  ;;  %4361 = vmatprep.subr.bf16.mxu1 %v4796_v14  ;;  %v4805_v24 = vld [vmem:[%s5952_s3 + $0x118] sm:$0xff]  }
  0x5a   : > { %v1729_v61 = vrot.slane %v1727_v56, 5  ;;  %v4080_v0 = vcombine.low %v1688_v59, %v1702_v62  ;;  %v1725_v3 = vrot.slane %v1724_v1, 4  ;;  %417 = vst [vmem:[#allocation2 + $0x10] sm:$0xf] %v5006_v7  ;;  %418 = vst [vmem:[#allocation2 + $0x14] sm:$0x1] %v5006_v7 }
  0x5b   : > { %v1716_v4 = vsel %vm5171_vm4, %v1711_v2, %v1715_v18  ;;  %421 = vst [vmem:[#allocation2 + $0x20] sm:$0xf] %v5006_v7  ;;  %422 = vst [vmem:[#allocation2 + $0x24] sm:$0x1] %v5006_v7  ;;  %v4824_v36 = vld [vmem:[%s5952_s3 + $0x78] sm:$0xff]  }
  0x5c   : > { %v1730_v5 = vsel %vm5171_vm4, %v1725_v3, %v1729_v61  ;;  %423 = vst [vmem:[#allocation2 + $0x28] sm:$0xf] %v5006_v7  ;;  %424 = vst [vmem:[#allocation2 + $0x2c] sm:$0x1] %v5006_v7  ;;  %4362 = vmatpush3.bf16.msra.mxu1 %v4798_v15 }
  0x5d   : > { %v4081_v6 = vcombine.low %v1716_v4, %v1730_v5  ;;  %425 = vst [vmem:[#allocation2 + $0x30] sm:$0xf] %v5006_v7  ;;  %426 = vst [vmem:[#allocation2 + $0x34] sm:$0x1] %v5006_v7  ;;  %4363 = vmatprep.subr.bf16.mxu1 %v4799_v17 }
  0x5e   : > { %4597 = vmatmul.mubr.msk.bf16.gmra.mxu1 %vm476_vm1, %v4791_v45  ;;  %427 = vst [vmem:[#allocation2 + $0x38] sm:$0xf] %v5006_v7  ;;  %428 = vst [vmem:[#allocation2 + $0x3c] sm:$0x1] %v5006_v7 }
  0x5f   : > { %429 = vst [vmem:[#allocation2 + $0x40] sm:$0xf] %v5006_v7  ;;  %430 = vst [vmem:[#allocation2 + $0x44] sm:$0x1] %v5006_v7 }
  0x60   : > { %4603 = vmatmul.mubr.msk.bf16.vlgmr.msra.gmra.mxu0 %vm476_vm1, %v4079_v33  ;;  %431 = vst [vmem:[#allocation2 + $0x48] sm:$0xf] %v5006_v7  ;;  %432 = vst [vmem:[#allocation2 + $0x4c] sm:$0x1] %v5006_v7  ;;  %4364 = vmatpush3.bf16.msra.mxu1 %v4801_v19 }
  0x61   : > { %4606 = vmatprep.mubr.msk.bf16.mxu0 %vm476_vm1, %v4080_v0  ;;  %4611 = vmatpush3.bf16.msra.mxu0 %v4792_v46 }
  0x62   : > { %4612 = vmatprep.subr.bf16.mxu0 %v4794_v8  ;;  %4365 = vmatprep.subr.bf16.mxu1 %v4802_v21 }
  0x64   : > { %4366 = vmatpush3.bf16.msra.mxu1 %v4804_v22 }
  0x65   : > { %4613 = vmatpush3.bf16.msra.mxu0 %v4794_v8  ;;  %4367 = vmatprep.subr.bf16.mxu1 %v4805_v24 }
  0x66   : > { %4614 = vmatprep.subr.bf16.mxu0 %v4797_v13 }
  0x68   : > { %4607 = vmatmul.mubr.msk.bf16.gmra.mxu0 %vm476_vm1, %v4081_v6  ;;  %4368 = vmatpush3.bf16.msra.mxu1 %v4807_v25 }
  0x69   : > { %4615 = vmatpush3.bf16.msra.mxu0 %v4797_v13  ;;  %4369 = vmatprep.subr.bf16.mxu1 %v4808_v27 }
  0x6a   : > { %4616 = vmatprep.subr.bf16.mxu0 %v4800_v16 }
  0x6c   : > { %4370 = vmatpush3.bf16.msra.mxu1 %v4810_v28 }
  0x6d   : > { %4617 = vmatpush3.bf16.msra.mxu0 %v4800_v16  ;;  %4371 = vmatprep.subr.bf16.mxu1 %v4811_v29 }
  0x6e   : > { %4618 = vmatprep.subr.bf16.mxu0 %v4803_v20 }
  0x70   : > { %4372 = vmatpush3.bf16.msra.mxu1 %v4813_v31 }
  0x71   : > { %4619 = vmatpush3.bf16.msra.mxu0 %v4803_v20  ;;  %4373 = vmatprep.subr.bf16.mxu1 %v4814_v32 }
  0x72   : > { %4620 = vmatprep.subr.bf16.mxu0 %v4806_v23 }
  0x74   : > { %4374 = vmatpush3.bf16.msra.mxu1 %v4821_v35 }
  0x75   : > { %4621 = vmatpush3.bf16.msra.mxu0 %v4806_v23  ;;  %4411 = vmatprep.subr.bf16.mxu1 %v4824_v36 }
  0x76   : > { %4622 = vmatprep.subr.bf16.mxu0 %v4809_v26 }
  0x79   : > { %4623 = vmatpush3.bf16.msra.mxu0 %v4809_v26 }
  0x7a   : > { %4624 = vmatprep.subr.bf16.mxu0 %v4812_v30 }
  0x7d   : > { %4625 = vmatpush3.bf16.msra.mxu0 %v4812_v30 }
  0x7e   : > { %4634 = vmatprep.subr.bf16.mxu0 %v5413_v34 }
  0xdd   : > { %v4524_v39 = vpop.f32.mrf.mxu0 }
  0xde   : > { %v4528_v37 = vpop.f32.mrf.mxu1 }
  0xdf   : > { %v527_v42 = vpop.f32.mrf.mxu0 }
  0xe0   : > { %v5422_v38 = vpop.f32.mrf.mxu1 }
  0xe1   : > { %v4525_v33 = vpop.f32.mrf.mxu0 }
  0xe2   : > { %v5424_v40 = vpop.f32.mrf.mxu1 }
  0xe3   : > { %v530_v48 = vpop.f32.mrf.mxu0 }
  0xe4   : > { %v5426_v41 = vpop.f32.mrf.mxu1 }
  0xe6   : > { %v4534_v43 = vpop.f32.mrf.mxu1 }
  0xe7   : > { %v636_v9 = vadd.f32 %v4534_v43, %v4524_v39 }
  0xe8   : > { %v627_v44 = vpop.f32.mrf.mxu1 }
  0xe9   : > { %v628_v14 = vadd.f32 %v627_v44, %v527_v42 }
  0xea   : > { %v4535_v45 = vpop.f32.mrf.mxu1 }
  0xeb   : > { %v639_v17 = vadd.f32 %v4535_v45, %v4525_v33 }
  0xec   : > { %v630_v47 = vpop.f32.mrf.mxu1 }
  0xed   : > { %v631_v22 = vadd.f32 %v630_v47, %v530_v48 }
  0xee   : > { %v4538_v49 = vpop.f32.mrf.mxu1  ;;  %v4544_v10 = vpop.f32.mrf.mxu0 }
  0xef   : > { %v884_v16 = vadd.f32 %v4544_v10, %v636_v9  ;;  %v652_v35 = vadd.f32 %v4538_v49, %v4528_v37 }
  0xf0   : > { %v643_v50 = vpop.f32.mrf.mxu1  ;;  %v851_v51 = vpop.f32.mrf.mxu0 }
  0xf1   : > { %v882_v21 = vadd.f32 %v851_v51, %v628_v14  ;;  %v644_v33 = vadd.f32 %v643_v50, %v5422_v38 }
  0xf2   : > { %v4539_v52 = vpop.f32.mrf.mxu1  ;;  %v4545_v53 = vpop.f32.mrf.mxu0 }
  0xf3   : > { %v885_v25 = vadd.f32 %v4545_v53, %v639_v17  ;;  %v655_v45 = vadd.f32 %v4539_v52, %v5424_v40 }
  0xf4   : > { %v646_v54 = vpop.f32.mrf.mxu1  ;;  %v854_v55 = vpop.f32.mrf.mxu0 }
  0xf5   : > { %v883_v29 = vadd.f32 %v854_v55, %v631_v22  ;;  %v647_v55 = vadd.f32 %v646_v54, %v5426_v41 }
  0xf6   : > { %v4554_v56 = vpop.f32.mrf.mxu1 }
  0xf7   : > { %v1006_v23 = vadd.f32 %v4554_v56, %v884_v16 }
  0xf8   : > { %v973_v57 = vpop.f32.mrf.mxu1  ;;  %v4548_v11 = vpop.f32.mrf.mxu0 }
  0xf9   : > { %v1004_v26 = vadd.f32 %v973_v57, %v882_v21  ;;  %v888_v53 = vadd.f32 %v4548_v11, %v652_v35 }
  0xfa   : > { %v4555_v18 = vpop.f32.mrf.mxu1  ;;  %v867_v58 = vpop.f32.mrf.mxu0 }
  0xfb   : > { %v1007_v31 = vadd.f32 %v4555_v18, %v885_v25  ;;  %v886_v38 = vadd.f32 %v867_v58, %v644_v33 }
  0xfc   : > { %v976_v59 = vpop.f32.mrf.mxu1  ;;  %v4549_v60 = vpop.f32.mrf.mxu0 }
  0xfd   : > { %v1005_v42 = vadd.f32 %v976_v59, %v883_v29  ;;  %v889_v40 = vadd.f32 %v4549_v60, %v655_v45 }
  0xfe   : > { %v4558_v61 = vpop.f32.mrf.mxu1  ;;  %v5428_v62 = vpop.f32.mrf.mxu0 }
  0xff   : > { %v1010_v50 = vadd.f32 %v4558_v61, %v888_v53  ;;  %v887_v41 = vadd.f32 %v5428_v62, %v647_v55  ;;  %v5461_v61 = vld [vmem:[%s5951_s2] ss:$0 sm:$0xff] }
 0x100   : > { %v5430_v63 = vpop.f32.mrf.mxu1  ;;  %v4564_v0 = vpop.f32.mrf.mxu0 }
 0x101   : > { %v1124_v30 = vadd.f32 %v4564_v0, %v1006_v23  ;;  %v1008_v54 = vadd.f32 %v5430_v63, %v886_v38 }
 0x102   : > { %v5432_v1 = vpop.f32.mrf.mxu1  ;;  %v1091_v2 = vpop.f32.mrf.mxu0 }
 0x103   : > { %v1122_v39 = vadd.f32 %v1091_v2, %v1004_v26 }
 0x104   : > { %v4565_v3 = vpop.f32.mrf.mxu0  ;;  %v5434_v4 = vpop.f32.mrf.mxu1 }
 0x105   : > { %v1125_v48 = vadd.f32 %v4565_v3, %v1007_v31  ;;  %v1011_v3 = vadd.f32 %v5432_v1, %v889_v40  ;;  %v1009_v58 = vadd.f32 %v5434_v4, %v887_v41 }
 0x106   : > { %v1094_v5 = vpop.f32.mrf.mxu0  ;;  %v4574_v7 = vpop.f32.mrf.mxu1 }
 0x107   : > { %v1357_v43 = vadd.f32 %v4574_v7, %v1124_v30  ;;  %v1123_v37 = vadd.f32 %v1094_v5, %v1005_v42 }
 0x108   : > { %v5436_v6 = vpop.f32.mrf.mxu0  ;;  %v1324_v8 = vpop.f32.mrf.mxu1 }
 0x109   : > { %v1355_v10 = vadd.f32 %v1324_v8, %v1122_v39 }
 0x10a   : > { %v5438_v46 = vpop.f32.mrf.mxu0  ;;  %v4575_v13 = vpop.f32.mrf.mxu1 }
 0x10b   : > { %v1358_v57 = vadd.f32 %v4575_v13, %v1125_v48  ;;  %v1128_v13 = vadd.f32 %v5436_v6, %v1010_v50  ;;  %v1126_v1 = vadd.f32 %v5438_v46, %v1008_v54  ;;  %v1986_v50 = vld [vmem:[#allocation2 + $0x18] sm:$0xf] }
 0x10c   : > { %v5440_v12 = vpop.f32.mrf.mxu0  ;;  %v1327_v19 = vpop.f32.mrf.mxu1 }
 0x10d   : > { %v1356_v0 = vadd.f32 %v1327_v19, %v1123_v37  ;;  %v1129_v17 = vadd.f32 %v5440_v12, %v1011_v3 }
 0x10e   : > { %v5442_v15 = vpop.f32.mrf.mxu0  ;;  %v4578_v27 = vpop.f32.mrf.mxu1 }
 0x10f   : > { %v1361_v19 = vadd.f32 %v4578_v27, %v1128_v13  ;;  %v1127_v23 = vadd.f32 %v5442_v15, %v1009_v58 }
 0x110   : > { %v4584_v20 = vpop.f32.mrf.mxu0  ;;  %v1340_v32 = vpop.f32.mrf.mxu1 }
 0x111   : > { %v1475_v49 = vadd.f32 %v4584_v20, %v1357_v43 }
 0x112   : > { %v1442_v24 = vpop.f32.mrf.mxu0  ;;  %v4579_v44 = vpop.f32.mrf.mxu1 }
 0x113   : > { %v1473_v59 = vadd.f32 %v1442_v24, %v1355_v10  ;;  %v1359_v24 = vadd.f32 %v1340_v32, %v1126_v1  ;;  %v1362_v25 = vadd.f32 %v4579_v44, %v1129_v17 }
 0x114   : > { %v4585_v28 = vpop.f32.mrf.mxu0  ;;  %v1343_v51 = vpop.f32.mrf.mxu1 }
 0x115   : > { %v1476_v7 = vadd.f32 %v4585_v28, %v1358_v57  ;;  %v1360_v35 = vadd.f32 %v1343_v51, %v1127_v23 }
 0x116   : > { %v1445_v36 = vpop.f32.mrf.mxu0  ;;  %v4594_v18 = vpop.f32.mrf.mxu1 }
 0x117   : > { %v1597_v11 = vadd.f32 %v4594_v18, %v1475_v49  ;;  %v1474_v14 = vadd.f32 %v1445_v36, %v1356_v0 }
 0x118   : > { %v4588_v47 = vpop.f32.mrf.mxu0  ;;  %v1564_v2 = vpop.f32.mrf.mxu1 }
 0x119   : > { %v1595_v8 = vadd.f32 %v1564_v2, %v1473_v59  ;;  %v1479_v46 = vadd.f32 %v4588_v47, %v1361_v19 }
 0x11a   : > { %v1458_v56 = vpop.f32.mrf.mxu0  ;;  %v4595_v9 = vpop.f32.mrf.mxu1 }
 0x11b   : > { %v1598_v16 = vadd.f32 %v4595_v9, %v1476_v7  ;;  %v1477_v15 = vadd.f32 %v1458_v56, %v1359_v24  ;;  %v1977_v9 = vld [vmem:[#allocation2 + $0xc] sm:$0x1]  ;;  %v1992_v24 = vld [vmem:[#allocation2 + $0x20] sm:$0xf]  ;;  %v4825_v56 = vld [vmem:[%s5952_s3 + $0xb0] sm:$0xff]  }
 0x11c   : > { %v4589_v52 = vpop.f32.mrf.mxu0  ;;  %v1567_v63 = vpop.f32.mrf.mxu1 }
 0x11d   : > { %v1596_v4 = vadd.f32 %v1567_v63, %v1474_v14  ;;  %v1480_v32 = vadd.f32 %v4589_v52, %v1362_v25  ;;  %v1989_v52 = vld [vmem:[#allocation2 + $0x1c] sm:$0x1]  ;;  %v1995_v25 = vld [vmem:[#allocation2 + $0x24] sm:$0x1] }
 0x11e   : > { %v1461_v5 = vpop.f32.mrf.mxu0  ;;  %v4598_v22 = vpop.f32.mrf.mxu1 }
 0x11f   : > { %v1601_v44 = vadd.f32 %v4598_v22, %v1479_v46  ;;  %v1478_v47 = vadd.f32 %v1461_v5, %v1360_v35  ;;  %v1980_v35 = vld [vmem:[#allocation2 + $0x10] sm:$0xf] }
 0x120   : > { %v4604_v60 = vpop.f32.mrf.mxu0  ;;  %v1580_v31 = vpop.f32.mrf.mxu1 }
 0x121   : > { %v1826_v62 = vadd.f32 %v4604_v60, %v1597_v11  ;;  %v1599_v53 = vadd.f32 %v1580_v31, %v1477_v15 }
 0x122   : > { %v1793_v20 = vpop.f32.mrf.mxu0  ;;  %v4599_v43 = vpop.f32.mrf.mxu1 }
 0x123   : > { %v1841_v6 = vadd.f32 %v5461_v61, %v1826_v62  ;;  %v1824_v21 = vadd.f32 %v1793_v20, %v1595_v8  ;;  %v1602_v37 = vadd.f32 %v4599_v43, %v1480_v32  ;;  %v1971_v8 = vld [vmem:[#allocation2 + $0x8] sm:$0xf] }
 0x124   : > { %v4605_v26 = vpop.f32.mrf.mxu0  ;;  %v1583_v10 = vpop.f32.mrf.mxu1 }
 0x125   : > { %v1849_v28 = vmax.f32 %v1841_v6, 0.0  ;;  %v1839_v29 = vadd.f32 %v5461_v61, %v1824_v21  ;;  %v1827_v30 = vadd.f32 %v4605_v26, %v1598_v16  ;;  %v1600_v41 = vadd.f32 %v1583_v10, %v1478_v47  ;;  %v2010_v47 = vld [vmem:[#allocation2 + $0x38] sm:$0xf] }
 0x126   : > { %v1796_v12 = vpop.f32.mrf.mxu0 }
 0x127   : > { %v4276_v27 = vpack.c.bf16 %v1849_v28, %v1849_v28  ;;  %v1847_v36 = vmax.f32 %v1839_v29, 0.0  ;;  %v1842_v39 = vadd.f32 %v5461_v61, %v1827_v30  ;;  %v1825_v42 = vadd.f32 %v1796_v12, %v1596_v4  ;;  %v1983_v12 = vld [vmem:[#allocation2 + $0x14] sm:$0x1] }
 0x128   : > { %v4608_v55 = vpop.f32.mrf.mxu0 }
 0x129   : > { %v1904_v33 = vshrl.u32 %v4276_v27, 16  ;;  %v4274_v45 = vpack.c.bf16 %v1847_v36, %v1847_v36  ;;  %v1850_v48 = vmax.f32 %v1842_v39, 0.0  ;;  %v1840_v51 = vadd.f32 %v5461_v61, %v1825_v42 }
 0x12a   : > { %v1907_v57 = vshll.u32 %v4276_v27, 16  ;;  %v1830_v11 = vadd.f32 %v4608_v55, %v1601_v44  ;;  %v1809_v2 = vpop.f32.mrf.mxu0 }
 0x12b   : > { %v1906_v49 = vrot.slane %v1904_v33, 7  ;;  %v1888_v18 = vshrl.u32 %v4274_v45, 16  ;;  %v4277_v38 = vpack.c.bf16 %v1850_v48, %v1850_v48  ;;  %v1891_v59 = vshll.u32 %v4274_v45, 16 }
 0x12c   : > { %v1848_v0 = vmax.f32 %v1840_v51, 0.0  ;;  %v1845_v60 = vadd.f32 %v5461_v61, %v1830_v11  ;;  %v1828_v14 = vadd.f32 %v1809_v2, %v1599_v53  ;;  %v4609_v62 = vpop.f32.mrf.mxu0 }
 0x12d   : > { %v1909_v54 = vor.u32 %v1907_v57, %v1906_v49  ;;  %v1910_v3 = vrot.slane %v1906_v49, 4  ;;  %v1890_v5 = vrot.slane %v1888_v18, 7  ;;  %v1912_v7 = vshrl.u32 %v4277_v38, 16 }
 0x12e   : > { %v1915_v13 = vshll.u32 %v4277_v38, 16  ;;  %v4275_v58 = vpack.c.bf16 %v1848_v0, %v1848_v0  ;;  %v1853_v21 = vmax.f32 %v1845_v60, 0.0  ;;  %v1812_v4 = vpop.f32.mrf.mxu0  ;;  %v1843_v26 = vadd.f32 %v5461_v61, %v1828_v14  ;;  %v1998_v38 = vld [vmem:[#allocation2 + $0x28] sm:$0xf]  ;;  %v2016_v60 = vld [vmem:[#allocation2 + $0x40] sm:$0xf] }
 0x12f   : > { %v1987_v16 = vsel %vm5472_vm9, %v1909_v54, %v1986_v50  ;;  %v1990_v63 = vsel %vm5477_vm10, %v1910_v3, %v1989_v52  ;;  %v1893_v1 = vor.u32 %v1891_v59, %v1890_v5  ;;  %v1894_v17 = vrot.slane %v1890_v5, 4  ;;  %v2001_v50 = vld [vmem:[#allocation2 + $0x2c] sm:$0x1]  ;;  %v2019_v14 = vld [vmem:[#allocation2 + $0x44] sm:$0x1] }
 0x130   : > { %1988 = vst [vmem:[#allocation2 + $0x18] sm:$0xf] %v1987_v16  ;;  %1991 = vst [vmem:[#allocation2 + $0x1c] sm:$0x1] %v1990_v63  ;;  %v1914_v19 = vrot.slane %v1912_v7, 7  ;;  %v1896_v20 = vshrl.u32 %v4275_v58, 16  ;;  %v1831_v28 = vadd.f32 %v4609_v62, %v1602_v37  ;;  %v4280_v46 = vpack.c.bf16 %v1853_v21, %v1853_v21 }
 0x131   : > { %v1899_v6 = vshll.u32 %v4275_v58, 16  ;;  %v1972_v22 = vsel %vm5472_vm9, %v1893_v1, %v1971_v8  ;;  %v1978_v23 = vsel %vm5477_vm10, %v1894_v17, %v1977_v9  ;;  %v1851_v27 = vmax.f32 %v1843_v26, 0.0  ;;  %v2013_v37 = vld [vmem:[#allocation2 + $0x3c] sm:$0x1] }
 0x132   : > { %1973 = vst [vmem:[#allocation2 + $0x8] sm:$0xf] %v1972_v22  ;;  %1979 = vst [vmem:[#allocation2 + $0xc] sm:$0x1] %v1978_v23  ;;  %v1917_v29 = vor.u32 %v1915_v13, %v1914_v19  ;;  %v1918_v30 = vrot.slane %v1914_v19, 4  ;;  %v1898_v31 = vrot.slane %v1896_v20, 7  ;;  %v1846_v36 = vadd.f32 %v5461_v61, %v1831_v28 }
 0x133   : > { %v1829_v39 = vadd.f32 %v1812_v4, %v1600_v41  ;;  %v1936_v44 = vshrl.u32 %v4280_v46, 16  ;;  %v4278_v33 = vpack.c.bf16 %v1851_v27, %v1851_v27  ;;  %v1939_v55 = vshll.u32 %v4280_v46, 16  ;;  %v2004_v4 = vld [vmem:[#allocation2 + $0x30] sm:$0xf] }
 0x134   : > { %v1993_v42 = vsel %vm5472_vm9, %v1917_v29, %v1992_v24  ;;  %v1996_v43 = vsel %vm5477_vm10, %v1918_v30, %v1995_v25  ;;  %v1901_v15 = vor.u32 %v1899_v6, %v1898_v31  ;;  %v1902_v32 = vrot.slane %v1898_v31, 4  ;;  %v2007_v31 = vld [vmem:[#allocation2 + $0x34] sm:$0x1] }
 0x135   : > { %1994 = vst [vmem:[#allocation2 + $0x20] sm:$0xf] %v1993_v42  ;;  %1997 = vst [vmem:[#allocation2 + $0x24] sm:$0x1] %v1996_v43  ;;  %v1854_v45 = vmax.f32 %v1846_v36, 0.0  ;;  %v1844_v51 = vadd.f32 %v5461_v61, %v1829_v39  ;;  %v1938_v53 = vrot.slane %v1936_v44, 7 }
 0x136   : > { %v1981_v48 = vsel %vm5472_vm9, %v1901_v15, %v1980_v35  ;;  %v1984_v10 = vsel %vm5477_vm10, %v1902_v32, %v1983_v12  ;;  %v1920_v49 = vshrl.u32 %v4278_v33, 16  ;;  %v1923_v18 = vshll.u32 %v4278_v33, 16 }
 0x137   : > { %1982 = vst [vmem:[#allocation2 + $0x10] sm:$0xf] %v1981_v48  ;;  %1985 = vst [vmem:[#allocation2 + $0x14] sm:$0x1] %v1984_v10  ;;  %v4281_v57 = vpack.c.bf16 %v1854_v45, %v1854_v45  ;;  %v1852_v52 = vmax.f32 %v1844_v51, 0.0  ;;  %v1941_v0 = vor.u32 %v1939_v55, %v1938_v53  ;;  %v1942_v11 = vrot.slane %v1938_v53, 4 }
 0x138   : > { %v2249_v59 = vld [vmem:[#allocation2 + $0x1c] sm:$0x1]  ;;  %v1922_v2 = vrot.slane %v1920_v49, 7  ;;  %v2257_v54 = vld [vmem:[#allocation2 + $0x18] sm:$0xe] }
 0x139   : > { %v1944_v41 = vshrl.u32 %v4281_v57, 16  ;;  %v1947_v3 = vshll.u32 %v4281_v57, 16  ;;  %v4279_v5 = vpack.c.bf16 %v1852_v52, %v1852_v52  ;;  %v5501_v61 = vld [vmem:[#allocation2 + $0x8] sm:$0xf]  ;;  %v2247_v7 = vld [vmem:[#allocation2 + $0xc] sm:$0x1]  ;;  %v2011_v8 = vsel %vm5472_vm9, %v1941_v0, %v2010_v47 }
 0x13a   : > { %v2014_v9 = vsel %vm5477_vm10, %v1942_v11, %v2013_v37  ;;  %v1925_v13 = vor.u32 %v1923_v18, %v1922_v2  ;;  %v1926_v58 = vrot.slane %v1922_v2, 4  ;;  %v5507_v62 = vld [vmem:[#allocation2 + $0x18] sm:$0xf]  ;;  %2012 = vst [vmem:[#allocation2 + $0x38] sm:$0xf] %v2011_v8  ;;  %v4121_v19 = vcombine.low %v2257_v54, %v2249_v59 }
 0x13b   : > { %2015 = vst [vmem:[#allocation2 + $0x3c] sm:$0x1] %v2014_v9  ;;  %v1946_v16 = vrot.slane %v1944_v41, 7  ;;  %v1928_v63 = vshrl.u32 %v4279_v5, 16  ;;  %v2255_v1 = vld [vmem:[#allocation2 + $0x8] sm:$0xe]  ;;  %v4111_v22 = vcombine.low %v5501_v61, %v2247_v7  ;;  %v4113_v36 = vcombine.low %v5507_v62, %v2249_v59 }
 0x13c   : > { %v2250_v17 = vld [vmem:[#allocation2 + $0x24] sm:$0x1]  ;;  %v1999_v20 = vsel %vm5472_vm9, %v1925_v13, %v1998_v38  ;;  %v2002_v6 = vsel %vm5477_vm10, %v1926_v58, %v2001_v50  ;;  %v1931_v21 = vshll.u32 %v4279_v5, 16  ;;  %v2258_v23 = vld [vmem:[#allocation2 + $0x20] sm:$0xe]  ;;  %v4119_v12 = vcombine.low %v2255_v1, %v2247_v7  ;;  %v4826_v1 = vld [vmem:[%s5952_s3 + $0x38] sm:$0xff]  }
 0x13d   : > { %2000 = vst [vmem:[#allocation2 + $0x28] sm:$0xf] %v1999_v20  ;;  %2003 = vst [vmem:[#allocation2 + $0x2c] sm:$0x1] %v2002_v6  ;;  %v1949_v24 = vor.u32 %v1947_v3, %v1946_v16  ;;  %v1950_v25 = vrot.slane %v1946_v16, 4  ;;  %v1930_v26 = vrot.slane %v1928_v63, 7  ;;  %v4122_v30 = vcombine.low %v2258_v23, %v2250_v17 }
 0x13e   : > { %v5514_v28 = vld [vmem:[#allocation2 + $0x10] sm:$0xf]  ;;  %v2248_v29 = vld [vmem:[#allocation2 + $0x14] sm:$0x1]  ;;  %v5517_v27 = vld [vmem:[#allocation2 + $0x20] sm:$0xf] }
 0x13f   : > { %v2256_v46 = vld [vmem:[#allocation2 + $0x10] sm:$0xe]  ;;  %v4112_v35 = vcombine.low %v5514_v28, %v2248_v29  ;;  %v2017_v39 = vsel %vm5472_vm9, %v1949_v24, %v2016_v60  ;;  %v2020_v42 = vsel %vm5477_vm10, %v1950_v25, %v2019_v14  ;;  %v1933_v43 = vor.u32 %v1931_v21, %v1930_v26  ;;  %v5529_v53 = vld [vmem:[#allocation2 + $0x4] sm:$0x1]  ;;  %v2038_v18 = vld [vmem:[#allocation2] sm:$0xe] }
 0x140   : > { %v1934_v15 = vrot.slane %v1930_v26, 4  ;;  %2018 = vst [vmem:[#allocation2 + $0x40] sm:$0xf] %v2017_v39  ;;  %2021 = vst [vmem:[#allocation2 + $0x44] sm:$0x1] %v2020_v42  ;;  %v4120_v32 = vcombine.low %v2256_v46, %v2248_v29  ;;  %v2385_v44 = vrot.slane %v4121_v19, 1  ;;  %v4114_v51 = vcombine.low %v5517_v27, %v2250_v17 }
 0x141   : > { %v2386_v33 = vrot.slane %v4122_v30, 1  ;;  %v2306_v45 = vshll.u32 %v4111_v22, 16  ;;  %v2005_v48 = vsel %vm5472_vm9, %v1933_v43, %v2004_v4  ;;  %v2313_v47 = vshll.u32 %v4112_v35, 16  ;;  %v5534_v59 = vld [vmem:[#allocation2 + $0xc] sm:$0x1]  ;;  %v4833_v23 = vld [vmem:[%s5952_s3 + $0x70] sm:$0xff]  }
 0x142   : > { %v2008_v10 = vsel %vm5477_vm10, %v1934_v15, %v2007_v31  ;;  %2006 = vst [vmem:[#allocation2 + $0x30] sm:$0xf] %v2005_v48  ;;  %v2383_v55 = vrot.slane %v4119_v12, 1  ;;  %v2384_v37 = vrot.slane %v4120_v32, 1  ;;  %v2304_v49 = vshrl.u32 %v4111_v22, 16  ;;  %v4834_v24 = vld [vmem:[%s5952_s3 + $0xa8] sm:$0xff]  }
 0x143   : > { %2009 = vst [vmem:[#allocation2 + $0x34] sm:$0x1] %v2008_v10  ;;  %v2308_v57 = vrot.slane %v2306_v45, 1  ;;  %v2311_v38 = vshrl.u32 %v4112_v35, 16  ;;  %v2315_v50 = vrot.slane %v2313_v47, 1  ;;  %v2320_v40 = vshll.u32 %v4113_v36, 16 }
 0x144   : > { %v2327_v52 = vshll.u32 %v4114_v51, 16  ;;  %v4129_v0 = vcombine.low %v2383_v55, %v2384_v37  ;;  %v4132_v11 = vcombine.low %v2385_v44, %v2386_v33  ;;  %v2318_v2 = vshrl.u32 %v4113_v36, 16  ;;  %v5536_v54 = vld [vmem:[#allocation2 + $0x28] sm:$0xf]  ;;  %v2251_v3 = vld [vmem:[#allocation2 + $0x2c] sm:$0x1] }
 0x145   : > { %v2325_v41 = vshrl.u32 %v4114_v51, 16  ;;  %v2309_v5 = vor.u32 %v2308_v57, %v2304_v49  ;;  %v2316_v7 = vor.u32 %v2315_v50, %v2311_v38  ;;  %v2322_v8 = vrot.slane %v2320_v40, 1  ;;  %v2259_v13 = vld [vmem:[#allocation2 + $0x28] sm:$0xe]  ;;  %v2253_v60 = vld [vmem:[#allocation2 + $0x3c] sm:$0x1] }
 0x146   : > { %v2329_v9 = vrot.slane %v2327_v52, 1  ;;  %v2039_v58 = vld [vmem:[#allocation2 + $0x8] sm:$0xe]  ;;  %4626 = vmatprep.mubr.bf16.mxu0 %v4129_v0  ;;  %v2261_v14 = vld [vmem:[#allocation2 + $0x38] sm:$0xe]  ;;  %v4103_v16 = vcombine.low %v2038_v18, %v5529_v53  ;;  %v4115_v20 = vcombine.low %v5536_v54, %v2251_v3  ;;  %v4127_v4 = vcombine.low %v5501_v61, %v5514_v28  ;;  %v4839_v42 = vld [vmem:[%s5952_s3 + $0x30] sm:$0xff]  }
 0x147   : > { %4627 = vmatmul.mubr.bf16.vlgmr.msra.gmra.mxu0 %v4132_v11  ;;  %v4128_v63 = vcombine.low %v2309_v5, %v2316_v7  ;;  %v2323_v17 = vor.u32 %v2322_v8, %v2318_v2  ;;  %v2254_v6 = vld [vmem:[#allocation2 + $0x44] sm:$0x1]  ;;  %v2262_v21 = vld [vmem:[#allocation2 + $0x40] sm:$0xe]  ;;  %v4123_v22 = vcombine.low %v2259_v13, %v2251_v3  ;;  %v4104_v29 = vcombine.low %v2039_v58, %v5534_v59  ;;  %v5558_v12 = vld [vmem:[#allocation2 + $0x38] sm:$0xf] }
 0x148   : > { %v2330_v19 = vor.u32 %v2329_v9, %v2325_v41  ;;  %4635 = vmatpush3.bf16.msra.mxu0 %v5413_v34  ;;  %v5552_v25 = vld [vmem:[#allocation2 + $0x40] sm:$0xf]  ;;  %v4126_v26 = vcombine.low %v2262_v21, %v2254_v6  ;;  %v4125_v31 = vcombine.low %v2261_v14, %v2253_v60  ;;  %v2334_v43 = vshll.u32 %v4115_v20, 16  ;;  %v4845_v10 = vld [vmem:[%s5952_s3 + $0x68] sm:$0xff]   ;;  %v4850_v8 = vld [vmem:[%s5952_s3 + $0x98] sm:$0xff]  }
 0x149   : > { %2655 = vmatprep.mubr.bf16.mxu1 %v4128_v63  ;;  %4636 = vmatprep.subr.bf16.mxu0 %v4825_v56  ;;  %v5555_v61 = vld [vmem:[#allocation2 + $0x30] sm:$0xf]  ;;  %v4118_v36 = vcombine.low %v5552_v25, %v2254_v6  ;;  %v2387_v15 = vrot.slane %v4123_v22, 1  ;;  %v2166_v44 = vrot.slane %v4103_v16, 1  ;;  %v2167_v33 = vrot.slane %v4104_v29, 1  ;;  %v4846_v37 = vld [vmem:[%s5952_s3 + $0xa0] sm:$0xff]  }
 0x14a   : > { %v4131_v30 = vcombine.low %v2323_v17, %v2330_v19  ;;  %v2252_v34 = vld [vmem:[#allocation2 + $0x34] sm:$0x1]  ;;  %v2260_v28 = vld [vmem:[#allocation2 + $0x30] sm:$0xe]  ;;  %2656 = vmatmul.mubr.bf16.vlgmr.msra.gmra.mxu1 %v4127_v4  ;;  %v2390_v39 = vrot.slane %v4126_v26, 1  ;;  %v4117_v45 = vcombine.low %v5558_v12, %v2253_v60  ;;  %v2389_v48 = vrot.slane %v4125_v31, 1 }
 0x14b   : > { %v4116_v46 = vcombine.low %v5555_v61, %v2252_v34  ;;  %v4124_v35 = vcombine.low %v2260_v28, %v2252_v34  ;;  %4412 = vmatpush3.bf16.msra.mxu1 %v4826_v1  ;;  %v2336_v47 = vrot.slane %v2334_v43, 1  ;;  %v2332_v49 = vshrl.u32 %v4115_v20, 16  ;;  %v5571_v18 = vld [vmem:[#allocation2] sm:$0xf]  ;;  %v5573_v40 = vld [vmem:[#allocation2 + $0x8] sm:$0xf] }
 0x14c   : > { %2663 = vmatprep.mubr.bf16.mxu1 %v4131_v30  ;;  %4637 = vmatpush3.bf16.msra.mxu0 %v4825_v56  ;;  %v4138_v57 = vcombine.low %v2389_v48, %v2390_v39  ;;  %v2355_v56 = vshll.u32 %v4118_v36, 16  ;;  %v4165_v52 = vcombine.low %v2166_v44, %v2167_v33  ;;  %v4848_v0 = vld [vmem:[%s5952_s3 + $0x28] sm:$0xff]   ;;  %v4130_v11 = vcombine.low %v5507_v62, %v5517_v27  ;;  %v4849_v3 = vld [vmem:[%s5952_s3 + $0x60] sm:$0xff]   ;;  %v4853_v58 = vld [vmem:[%s5952_s3 + $0x90] sm:$0xff]  }
 0x14d   : > { %v2388_v32 = vrot.slane %v4124_v35, 1  ;;  %4413 = vmatprep.subr.bf16.mxu1 %v4833_v23  ;;  %4638 = vmatprep.subr.bf16.mxu0 %v4834_v24  ;;  %v2341_v51 = vshll.u32 %v4116_v46, 16  ;;  %v2339_v38 = vshrl.u32 %v4116_v46, 16  ;;  %v2337_v2 = vor.u32 %v2336_v47, %v2332_v49  ;;  %v4851_v13 = vld [vmem:[%s5952_s3 + $0x20] sm:$0xff]   ;;  %v2032_v17 = vld [vmem:[#allocation2 + $0x14] sm:$0x1] }
 0x14e   : > { %v2348_v5 = vshll.u32 %v4117_v45, 16  ;;  %v4095_v7 = vcombine.low %v5571_v18, %v5529_v53  ;;  %v4096_v9 = vcombine.low %v5573_v40, %v5534_v59  ;;  %v2357_v27 = vrot.slane %v2355_v56, 1  ;;  %v4852_v53 = vld [vmem:[%s5952_s3 + $0x58] sm:$0xff]   ;;  %v5599_v19 = vld [vmem:[#allocation2 + $0x10] sm:$0xf]  ;;  %v4859_v35 = vld [vmem:[%s5952_s3 + $0x48] sm:$0xff]  }
 0x14f   : > { %v4135_v55 = vcombine.low %v2387_v15, %v2388_v32  ;;  %4414 = vmatpush3.bf16.msra.mxu1 %v4839_v42  ;;  %v2343_v50 = vrot.slane %v2341_v51, 1  ;;  %v2353_v60 = vshrl.u32 %v4118_v36, 16  ;;  %v2346_v16 = vshrl.u32 %v4117_v45, 16  ;;  %v4855_v20 = vld [vmem:[%s5952_s3 + $0x18] sm:$0xff]   ;;  %v4856_v4 = vld [vmem:[%s5952_s3 + $0x50] sm:$0xff]   ;;  %v4860_v42 = vld [vmem:[%s5952_s3 + $0x80] sm:$0xff]  }
 0x150   : > { %4639 = vmatpush3.bf16.msra.mxu0 %v4834_v24  ;;  %4415 = vmatprep.subr.bf16.mxu1 %v4845_v10  ;;  %v2350_v59 = vrot.slane %v2348_v5, 1  ;;  %v2089_v14 = vshll.u32 %v4095_v7, 16  ;;  %v2096_v1 = vshll.u32 %v4096_v9, 16  ;;  %v4133_v6 = vcombine.low %v5536_v54, %v5555_v61  ;;  %v2033_v22 = vld [vmem:[#allocation2 + $0x1c] sm:$0x1]  ;;  %v4857_v24 = vld [vmem:[%s5952_s3 + $0x88] sm:$0xff]  }
 0x151   : > { %4630 = vmatprep.mubr.bf16.mxu0 %v4135_v55  ;;  %v2344_v41 = vor.u32 %v2343_v50, %v2339_v38  ;;  %4640 = vmatprep.subr.bf16.mxu0 %v4846_v37  ;;  %v2358_v63 = vor.u32 %v2357_v27, %v2353_v60  ;;  %v5609_v23 = vld [vmem:[#allocation2 + $0x18] sm:$0xf]  ;;  %v2087_v26 = vshrl.u32 %v4095_v7, 16  ;;  %v2040_v29 = vld [vmem:[#allocation2 + $0x10] sm:$0xe]  ;;  %v5615_v30 = vcombine.low %v5599_v19, %v2032_v17  ;;  %v4862_v55 = vld [vmem:[%s5952_s3 + $0x8] sm:$0xff]  }
 0x152   : > { %4631 = vmatmul.mubr.bf16.gmra.mxu0 %v4138_v57  ;;  %2664 = vmatmul.mubr.bf16.gmra.mxu1 %v4130_v11  ;;  %v2351_v21 = vor.u32 %v2350_v59, %v2346_v16  ;;  %v2091_v54 = vrot.slane %v2089_v14, 1  ;;  %v2098_v61 = vrot.slane %v2096_v1, 1  ;;  %v2035_v28 = vld [vmem:[#allocation2 + $0x2c] sm:$0x1]  ;;  %v2043_v31 = vld [vmem:[#allocation2 + $0x28] sm:$0xe]  ;;  %v5624_v39 = vcombine.low %v5609_v23, %v2033_v22 }
 0x153   : > { %4650 = vmatprep.mubr.bf16.mxu0 %v4165_v52  ;;  %v4134_v62 = vcombine.low %v2337_v2, %v2344_v41  ;;  %4416 = vmatpush3.bf16.msra.mxu1 %v4848_v0  ;;  %v4858_v46 = vld [vmem:[%s5952_s3 + $0x10] sm:$0xff]   ;;  %v2041_v36 = vld [vmem:[#allocation2 + $0x18] sm:$0xe]  ;;  %v2094_v43 = vshrl.u32 %v4096_v9, 16  ;;  %v4105_v15 = vcombine.low %v2040_v29, %v2032_v17  ;;  %v2034_v32 = vld [vmem:[#allocation2 + $0x24] sm:$0x1]  ;;  %v4108_v33 = vcombine.low %v2043_v31, %v2035_v28 }
 0x154   : > { %4641 = vmatpush3.bf16.msra.mxu0 %v4846_v37  ;;  %4417 = vmatprep.subr.bf16.mxu1 %v4849_v3  ;;  %v4137_v34 = vcombine.low %v2351_v21, %v2358_v63  ;;  %v2042_v44 = vld [vmem:[#allocation2 + $0x20] sm:$0xe]  ;;  %v2103_v45 = vshll.u32 %v5615_v30, 16  ;;  %v2092_v48 = vor.u32 %v2091_v54, %v2087_v26  ;;  %v4106_v47 = vcombine.low %v2041_v36, %v2033_v22  ;;  %v5630_v51 = vld [vmem:[#allocation2 + $0x28] sm:$0xf]  ;;  %v4866_v56 = vld [vmem:[%s5952_s3 + $0x238] sm:$0xff]  }
 0x155   : > { %2671 = vmatprep.mubr.bf16.mxu1 %v4134_v62  ;;  %4642 = vmatprep.subr.bf16.mxu0 %v4850_v8  ;;  %v2099_v10 = vor.u32 %v2098_v61, %v2094_v43  ;;  %v4863_v37 = vld [vmem:[%s5952_s3 + $0x40] sm:$0xff]   ;;  %v4107_v49 = vcombine.low %v2042_v44, %v2034_v32  ;;  %v2110_v57 = vshll.u32 %v5624_v39, 16  ;;  %v4136_v38 = vcombine.low %v5558_v12, %v5552_v25  ;;  %v2036_v0 = vld [vmem:[#allocation2 + $0x34] sm:$0x1]  ;;  %v2037_v3 = vld [vmem:[#allocation2 + $0x3c] sm:$0x1] }
 0x156   : > { %v2168_v50 = vrot.slane %v4105_v15, 1  ;;  %v5644_v52 = vld [vmem:[#allocation2 + $0x20] sm:$0xf]  ;;  %v5647_v11 = vcombine.low %v5630_v51, %v2035_v28  ;;  %v2171_v2 = vrot.slane %v4108_v33, 1  ;;  %v2105_v41 = vrot.slane %v2103_v45, 1  ;;  %v4872_v60 = vld [vmem:[%s5952_s3 + $0x1f8] sm:$0xff]  }
 0x157   : > { %4418 = vmatpush3.bf16.msra.mxu1 %v4851_v13  ;;  %v2044_v5 = vld [vmem:[#allocation2 + $0x30] sm:$0xe]  ;;  %v4164_v7 = vcombine.low %v2092_v48, %v2099_v10  ;;  %v5649_v9 = vld [vmem:[#allocation2 + $0x14] sm:$0x1]  ;;  %v4867_v12 = vld [vmem:[%s5952_s3] sm:$0xff]   ;;  %v5655_v62 = vcombine.low %v5644_v52, %v2034_v32  ;;  %v2170_v27 = vrot.slane %v4107_v49, 1  ;;  %v4163_v54 = vcombine.low %v5571_v18, %v5573_v40 }
 0x158   : > { %4643 = vmatpush3.bf16.msra.mxu0 %v4850_v8  ;;  %4419 = vmatprep.subr.bf16.mxu1 %v4852_v53  ;;  %v2169_v8 = vrot.slane %v4106_v47, 1  ;;  %v3068_v25 = vld [vmem:[#allocation2 + $0x10] sm:$0xe]  ;;  %v2101_v13 = vshrl.u32 %v5615_v30, 16  ;;  %v2112_v53 = vrot.slane %v2110_v57, 1  ;;  %v2108_v14 = vshrl.u32 %v5624_v39, 16 }
 0x159   : > { %4644 = vmatprep.subr.bf16.mxu0 %v4853_v58  ;;  %v4109_v16 = vcombine.low %v2044_v5, %v2036_v0  ;;  %v5662_v63 = vld [vmem:[#allocation2 + $0x1c] sm:$0x1]  ;;  %v3069_v1 = vld [vmem:[#allocation2 + $0x18] sm:$0xe]  ;;  %v4171_v17 = vcombine.low %v2170_v27, %v2171_v2  ;;  %v4207_v21 = vcombine.low %v3068_v25, %v5649_v9  ;;  %v5669_v22 = vld [vmem:[#allocation2 + $0x30] sm:$0xf] }
 0x15a   : > { %2672 = vmatmul.mubr.bf16.gmra.mxu1 %v4133_v6  ;;  %v4168_v59 = vcombine.low %v2168_v50, %v2169_v8  ;;  %v2106_v6 = vor.u32 %v2105_v41, %v2101_v13  ;;  %v4874_v26 = vld [vmem:[%s5952_s3 + $0x1b8] sm:$0xff]   ;;  %v2113_v29 = vor.u32 %v2112_v53, %v2108_v14  ;;  %v4208_v30 = vcombine.low %v3069_v1, %v5662_v63  ;;  %v4881_v31 = vld [vmem:[%s5952_s3 + $0x1f0] sm:$0xff]   ;;  %v4882_v36 = vld [vmem:[%s5952_s3 + $0x228] sm:$0xff]  }
 0x15b   : > { %4420 = vmatpush3.bf16.msra.mxu1 %v4855_v20  ;;  %2679 = vmatprep.mubr.bf16.mxu1 %v4137_v34  ;;  %v4873_v20 = vld [vmem:[%s5952_s3 + $0x230] sm:$0xff]   ;;  %v2117_v34 = vshll.u32 %v5655_v62, 16  ;;  %v5678_v61 = vld [vmem:[#allocation2 + $0x38] sm:$0xf]  ;;  %v2172_v28 = vrot.slane %v4109_v16, 1  ;;  %v3196_v39 = vrot.slane %v4207_v21, 1  ;;  %v4169_v14 = vcombine.low %v5644_v52, %v5630_v51 }
 0x15c   : > { %4645 = vmatpush3.bf16.msra.mxu0 %v4853_v58  ;;  %4421 = vmatprep.subr.bf16.mxu1 %v4856_v4  ;;  %v2045_v58 = vld [vmem:[#allocation2 + $0x38] sm:$0xe]  ;;  %v2124_v4 = vshll.u32 %v5647_v11, 16  ;;  %v4102_v40 = vcombine.low %v5678_v61, %v2037_v3  ;;  %v4883_v43 = vld [vmem:[%s5952_s3 + $0x1b0] sm:$0xff]   ;;  %v3197_v15 = vrot.slane %v4208_v30, 1  ;;  %v2122_v44 = vshrl.u32 %v5647_v11, 16 }
 0x15d   : > { %4646 = vmatprep.subr.bf16.mxu0 %v4857_v24  ;;  %v2119_v32 = vrot.slane %v2117_v34, 1  ;;  %v4889_v45 = vld [vmem:[%s5952_s3 + $0x1e8] sm:$0xff]   ;;  %v4890_v10 = vld [vmem:[%s5952_s3 + $0x220] sm:$0xff]   ;;  %v2115_v47 = vshrl.u32 %v5655_v62, 16  ;;  %v5699_v49 = vld [vmem:[#allocation2 + $0x10] sm:$0xf] }
 0x15e   : > { %v4217_v48 = vcombine.low %v3196_v39, %v3197_v15  ;;  %v4892_v57 = vld [vmem:[%s5952_s3 + $0x1a8] sm:$0xff]   ;;  %v2138_v50 = vshll.u32 %v4102_v40, 16  ;;  %v4893_v11 = vld [vmem:[%s5952_s3 + $0x1e0] sm:$0xff]   ;;  %v4199_v2 = vcombine.low %v5699_v49, %v5649_v9  ;;  %v4896_v9 = vld [vmem:[%s5952_s3 + $0x1d8] sm:$0xff]   ;;  %v2136_v62 = vshrl.u32 %v4102_v40, 16 }
 0x15f   : > { %4422 = vmatpush3.bf16.msra.mxu1 %v4858_v46  ;;  %v4167_v46 = vcombine.low %v2106_v6, %v2113_v29  ;;  %v4897_v25 = vld [vmem:[%s5952_s3 + $0x210] sm:$0xff]   ;;  %v3063_v13 = vld [vmem:[#allocation2 + $0x2c] sm:$0x1]  ;;  %v5727_v53 = vld [vmem:[#allocation2 + $0x28] sm:$0xf] }
 0x160   : > { %4647 = vmatpush3.bf16.msra.mxu0 %v4857_v24  ;;  %4423 = vmatprep.subr.bf16.mxu1 %v4859_v35  ;;  %v4110_v24 = vcombine.low %v2045_v58, %v2037_v3  ;;  %v4101_v35 = vcombine.low %v5669_v22, %v2036_v0  ;;  %v4166_v0 = vcombine.low %v5599_v19, %v5609_v23  ;;  %v4894_v3 = vld [vmem:[%s5952_s3 + $0x218] sm:$0xff]   ;;  %v4895_v19 = vld [vmem:[%s5952_s3 + $0x1a0] sm:$0xff]   ;;  %v2140_v8 = vrot.slane %v2138_v50, 1  ;;  %v4900_v16 = vld [vmem:[%s5952_s3 + $0x1d0] sm:$0xff]  }
 0x161   : > { %4648 = vmatprep.subr.bf16.mxu0 %v4860_v42  ;;  %v3119_v27 = vshll.u32 %v4199_v2, 16  ;;  %v4899_v58 = vld [vmem:[%s5952_s3 + $0x198] sm:$0xff]   ;;  %v5737_v1 = vld [vmem:[#allocation2 + $0x20] sm:$0xf]  ;;  %v3071_v21 = vld [vmem:[#allocation2 + $0x28] sm:$0xe] }
 0x162   : > { %2680 = vmatmul.mubr.bf16.gmra.mxu1 %v4136_v38  ;;  %v2173_v18 = vrot.slane %v4110_v24, 1  ;;  %v2120_v38 = vor.u32 %v2119_v32, %v2115_v47  ;;  %v2129_v23 = vshrl.u32 %v4101_v35, 16  ;;  %v4902_v51 = vld [vmem:[%s5952_s3 + $0x190] sm:$0xff]   ;;  %v3070_v52 = vld [vmem:[#allocation2 + $0x20] sm:$0xe]  ;;  %v3117_v24 = vshrl.u32 %v4199_v2, 16 }
 0x163   : > { %4424 = vmatpush3.bf16.msra.mxu1 %v4862_v55  ;;  %2953 = vmatprep.mubr.bf16.mxu1 %v4164_v7  ;;  %v3121_v6 = vrot.slane %v3119_v27, 1  ;;  %v3064_v29 = vld [vmem:[#allocation2 + $0x34] sm:$0x1]  ;;  %v3072_v30 = vld [vmem:[#allocation2 + $0x30] sm:$0xe]  ;;  %v4906_v15 = vld [vmem:[%s5952_s3 + $0x188] sm:$0xff]  }
 0x164   : > { %4649 = vmatpush3.bf16.msra.mxu0 %v4860_v42  ;;  %4425 = vmatprep.subr.bf16.mxu1 %v4863_v37  ;;  %v2126_v42 = vrot.slane %v2124_v4, 1  ;;  %v4174_v33 = vcombine.low %v2172_v28, %v2173_v18  ;;  %v2131_v37 = vshll.u32 %v4101_v35, 16  ;;  %v4202_v4 = vcombine.low %v5727_v53, %v3063_v13  ;;  %v4904_v28 = vld [vmem:[%s5952_s3 + $0x200] sm:$0xff]   ;;  %v3073_v39 = vld [vmem:[#allocation2 + $0x38] sm:$0xe] }
 0x165   : > { %4658 = vmatprep.subr.bf16.mxu0 %v4866_v56  ;;  %v5753_v40 = vld [vmem:[#allocation2 + $0x30] sm:$0xf]  ;;  %v3075_v50 = vld [vmem:[#allocation2 + $0x48] sm:$0xe]  ;;  %v3074_v2 = vld [vmem:[#allocation2 + $0x40] sm:$0xe] }
 0x166   : > { %v2127_v55 = vor.u32 %v2126_v42, %v2122_v44  ;;  %v2133_v5 = vrot.slane %v2131_v37, 1  ;;  %v3140_v42 = vshll.u32 %v4202_v4, 16 }
 0x167   : > { %4651 = vmatmul.mubr.bf16.vlgmr.msra.gmra.mxu0 %v4168_v59  ;;  %4426 = vmatpush3.bf16.msra.mxu1 %v4867_v12  ;;  %v2141_v59 = vor.u32 %v2140_v8, %v2136_v62  ;;  %v3059_v62 = vld [vmem:[#allocation2 + $0x48] sm:$0xf] }
 0x168   : > { %4654 = vmatprep.mubr.bf16.mxu0 %v4171_v17  ;;  %4659 = vmatpush3.bf16.msra.mxu0 %v4866_v56  ;;  %v5704_v56 = vld [vmem:[#allocation2 + $0x18] sm:$0xf]  ;;  %v4170_v41 = vcombine.low %v2120_v38, %v2127_v55  ;;  %v2134_v12 = vor.u32 %v2133_v5, %v2129_v23  ;;  %v3067_v55 = vld [vmem:[#allocation2 + $0x4c] sm:$0x1]  ;;  %v3142_v38 = vrot.slane %v3140_v42, 1  ;;  %v4925_v42 = vld [vmem:[%s5451_s26 + $0x10] sm:$0xff]  }
 0x169   : > { %4463 = vmatprep.subr.bf16.mxu1 %v4872_v60  ;;  %4660 = vmatprep.subr.bf16.mxu0 %v4873_v20  ;;  %v4200_v7 = vcombine.low %v5704_v56, %v5662_v63  ;;  %v3062_v63 = vld [vmem:[#allocation2 + $0x24] sm:$0x1]  ;;  %v4214_v8 = vcombine.low %v3075_v50, %v3067_v55 }
 0x16a   : > { %2954 = vmatmul.mubr.bf16.vlgmr.msra.gmra.mxu1 %v4163_v54  ;;  %v4173_v17 = vcombine.low %v2134_v12, %v2141_v59  ;;  %v4201_v34 = vcombine.low %v5737_v1, %v3062_v63  ;;  %v4903_v54 = vld [vmem:[%s5952_s3 + $0x1c8] sm:$0xff]   ;;  %v4209_v18 = vcombine.low %v3070_v52, %v3062_v63  ;;  %v3058_v59 = vld [vmem:[#allocation2 + $0x40] sm:$0xf]  ;;  %v4206_v63 = vcombine.low %v3059_v62, %v3067_v55 }
 0x16b   : > { %4464 = vmatpush3.bf16.msra.mxu1 %v4874_v26  ;;  %2961 = vmatprep.mubr.bf16.mxu1 %v4167_v46  ;;  %v3126_v60 = vshll.u32 %v4200_v7, 16  ;;  %v3122_v46 = vor.u32 %v3121_v6, %v3117_v24  ;;  %v3124_v35 = vshrl.u32 %v4200_v7, 16  ;;  %v3138_v7 = vshrl.u32 %v4202_v4, 16  ;;  %v4922_v24 = vld [vmem:[%s5451_s26] sm:$0xff]  }
 0x16c   : > { %4661 = vmatpush3.bf16.msra.mxu0 %v4873_v20  ;;  %4465 = vmatprep.subr.bf16.mxu1 %v4881_v31  ;;  %v4901_v20 = vld [vmem:[%s5952_s3 + $0x208] sm:$0xff]   ;;  %v4210_v31 = vcombine.low %v3071_v21, %v3063_v13  ;;  %v3133_v44 = vshll.u32 %v4201_v34, 16 }
 0x16d   : > { %4662 = vmatprep.subr.bf16.mxu0 %v4882_v36  ;;  %v3128_v26 = vrot.slane %v3126_v60, 1  ;;  %v3143_v12 = vor.u32 %v3142_v38, %v3138_v7 }
 0x16e   : > { %v3135_v5 = vrot.slane %v3133_v44, 1 }
 0x16f   : > { %4655 = vmatmul.mubr.bf16.gmra.mxu0 %v4174_v33  ;;  %4466 = vmatpush3.bf16.msra.mxu1 %v4883_v43  ;;  %v4211_v43 = vcombine.low %v3072_v30, %v3064_v29  ;;  %v3129_v32 = vor.u32 %v3128_v26, %v3124_v35  ;;  %v4172_v33 = vcombine.low %v5669_v22, %v5678_v61  ;;  %v3198_v22 = vrot.slane %v4209_v18, 1 }
 0x170   : > { %4674 = vmatprep.mubr.bf16.mxu0 %v4217_v48  ;;  %4663 = vmatpush3.bf16.msra.mxu0 %v4882_v36  ;;  %v3065_v36 = vld [vmem:[#allocation2 + $0x3c] sm:$0x1]  ;;  %v3199_v48 = vrot.slane %v4210_v31, 1  ;;  %v3168_v26 = vshll.u32 %v4206_v63, 16 }
 0x171   : > { %4467 = vmatprep.subr.bf16.mxu1 %v4889_v45  ;;  %4664 = vmatprep.subr.bf16.mxu0 %v4890_v10  ;;  %v4907_v45 = vld [vmem:[%s5952_s3 + $0x1c0] sm:$0xff]   ;;  %v4212_v47 = vcombine.low %v3073_v39, %v3065_v36  ;;  %v4216_v37 = vcombine.low %v3122_v46, %v3129_v32  ;;  %v3200_v61 = vrot.slane %v4211_v43, 1  ;;  %v3166_v46 = vshrl.u32 %v4206_v63, 16 }
 0x172   : > { %2962 = vmatmul.mubr.bf16.gmra.mxu1 %v4166_v0  ;;  %v3597_v0 = vld [vmem:[%s5955_s6] sm:$0x3]  ;;  %v3170_v35 = vrot.slane %v3168_v26, 1  ;;  %v4224_v32 = vcombine.low %v3058_v59, %v3059_v62 }
 0x173   : > { %4468 = vmatpush3.bf16.msra.mxu1 %v4892_v57  ;;  %2969 = vmatprep.mubr.bf16.mxu1 %v4170_v41  ;;  %v4203_v57 = vcombine.low %v5753_v40, %v3064_v29  ;;  %v4910_v41 = vld [vmem:[%s5952_s3 + $0x180] sm:$0xff]   ;;  %v3201_v23 = vrot.slane %v4212_v47, 1 }
 0x174   : > { %4665 = vmatpush3.bf16.msra.mxu0 %v4890_v10  ;;  %4469 = vmatprep.subr.bf16.mxu1 %v4893_v11  ;;  %v5763_v10 = vld [vmem:[#allocation2 + $0x38] sm:$0xf]  ;;  %v3066_v11 = vld [vmem:[#allocation2 + $0x44] sm:$0x1]  ;;  %v3171_v43 = vor.u32 %v3170_v35, %v3166_v46 }
 0x175   : > { %4666 = vmatprep.subr.bf16.mxu0 %v4894_v3  ;;  %v4213_v27 = vcombine.low %v3074_v2, %v3066_v11  ;;  %v3147_v13 = vshll.u32 %v4203_v57, 16  ;;  %v4205_v6 = vcombine.low %v3058_v59, %v3066_v11 }
 0x177   : > { %4470 = vmatpush3.bf16.msra.mxu1 %v4895_v19  ;;  %v4220_v19 = vcombine.low %v3198_v22, %v3199_v48  ;;  %v3202_v21 = vrot.slane %v4213_v27, 1  ;;  %v3149_v4 = vrot.slane %v3147_v13, 1  ;;  %v3159_v39 = vshrl.u32 %v4205_v6, 16 }
 0x178   : > { %4667 = vmatpush3.bf16.msra.mxu0 %v4894_v3  ;;  %4471 = vmatprep.subr.bf16.mxu1 %v4896_v9  ;;  %v4204_v3 = vcombine.low %v5763_v10, %v3065_v36  ;;  %v3633_v9 = vsel %vm489_vm0, %v3597_v0, 0  ;;  %v4923_v36 = vld [vmem:[%s5451_s26 + $0x8] sm:$0xff]  }
 0x179   : > { %4668 = vmatprep.subr.bf16.mxu0 %v4897_v25 }
 0x17a   : > { %2970 = vmatmul.mubr.bf16.gmra.mxu1 %v4169_v14  ;;  %v3154_v14 = vshll.u32 %v4204_v3, 16 }
 0x17b   : > { %4472 = vmatpush3.bf16.msra.mxu1 %v4899_v58  ;;  %2977 = vmatprep.mubr.bf16.mxu1 %v4173_v17  ;;  %v4223_v58 = vcombine.low %v3200_v61, %v3201_v23  ;;  %v3203_v17 = vrot.slane %v4214_v8, 1 }
 0x17c   : > { %4669 = vmatpush3.bf16.msra.mxu0 %v4897_v25  ;;  %4473 = vmatprep.subr.bf16.mxu1 %v4900_v16  ;;  %v3131_v25 = vshrl.u32 %v4201_v34, 16  ;;  %v4215_v16 = vcombine.low %v5699_v49, %v5704_v56  ;;  %v3156_v52 = vrot.slane %v3154_v14, 1  ;;  %v3152_v34 = vshrl.u32 %v4204_v3, 16 }
 0x17d   : > { %4670 = vmatprep.subr.bf16.mxu0 %v4901_v20  ;;  %v4226_v29 = vcombine.low %v3202_v21, %v3203_v17  ;;  %v3161_v49 = vshll.u32 %v4205_v6, 16 }
 0x17e   : > { %v3136_v60 = vor.u32 %v3135_v5, %v3131_v25  ;;  %v3157_v56 = vor.u32 %v3156_v52, %v3152_v34 }
 0x17f   : > { %4474 = vmatpush3.bf16.msra.mxu1 %v4902_v51  ;;  %v3145_v51 = vshrl.u32 %v4203_v57, 16  ;;  %v3163_v31 = vrot.slane %v3161_v49, 1 }
 0x180   : > { %4671 = vmatpush3.bf16.msra.mxu0 %v4901_v20  ;;  %4475 = vmatprep.subr.bf16.mxu1 %v4903_v54  ;;  %v4219_v20 = vcombine.low %v3136_v60, %v3143_v12  ;;  %v4218_v54 = vcombine.low %v5737_v1, %v5727_v53  ;;  %v4927_v1 = vld [vmem:[%s5451_s26 + $0x18] sm:$0xff]   ;;  %s5904_s26 = scalar_lea.sflag [#allocation4], %s377_s11 }
 0x181   : > { %4672 = vmatprep.subr.bf16.mxu0 %v4904_v28  ;;  %v3150_v30 = vor.u32 %v3149_v4, %v3145_v51  ;;  %v3164_v18 = vor.u32 %v3163_v31, %v3159_v39 }
 0x182   : > { %2978 = vmatmul.mubr.bf16.gmra.mxu1 %v4172_v33 }
 0x183   : > { %4476 = vmatpush3.bf16.msra.mxu1 %v4906_v15  ;;  %3468 = vmatprep.mubr.bf16.mxu1 %v4216_v37  ;;  %v4221_v15 = vcombine.low %v5753_v40, %v5763_v10  ;;  %v4225_v53 = vcombine.low %v3164_v18, %v3171_v43 }
 0x184   : > { %4673 = vmatpush3.bf16.msra.mxu0 %v4904_v28  ;;  %4477 = vmatprep.subr.bf16.mxu1 %v4907_v45  ;;  %v4222_v28 = vcombine.low %v3150_v30, %v3157_v56 }
 0x185   : > { %4704 = vmatprep.subr.msk.bf16.mxu0 %vm489_vm0, %v3597_v0 }
 0x187   : > { %4675 = vmatmul.mubr.bf16.vlgmr.msra.gmra.mxu0 %v4220_v19  ;;  %4478 = vmatpush3.bf16.msra.mxu1 %v4910_v41 }
 0x188   : > { %4678 = vmatprep.mubr.bf16.mxu0 %v4223_v58  ;;  %4683 = vmatpush3.bf16.msra.mxu0 %v3633_v9 }
 0x18a   : > { %3469 = vmatmul.mubr.bf16.vlgmr.msra.gmra.mxu1 %v4215_v16 }
 0x18b   : > { %3476 = vmatprep.mubr.bf16.mxu1 %v4219_v20 }
 0x18f   : > { %4679 = vmatmul.mubr.bf16.gmra.mxu0 %v4226_v29 }
 0x190   : > { %4684 = vmatprep.mubr.msk.bf16.mxu0 %vm476_vm1, %v4922_v24 }
 0x192   : > { %3477 = vmatmul.mubr.bf16.gmra.mxu1 %v4218_v54 }
 0x193   : > { %3484 = vmatprep.mubr.bf16.mxu1 %v4222_v28 }
 0x197   : > { %4685 = vmatmul.mubr.msk.bf16.vlgmr.msra.gmra.mxu0 %vm476_vm1, %v4923_v36 }
 0x198   : > { %4688 = vmatprep.mubr.msk.bf16.mxu0 %vm476_vm1, %v4925_v42 }
 0x19a   : > { %3485 = vmatmul.mubr.bf16.gmra.mxu1 %v4221_v15 }
 0x19b   : > { %3492 = vmatprep.mubr.bf16.mxu1 %v4225_v53 }
 0x19f   : > { %4689 = vmatmul.mubr.msk.bf16.gmra.mxu0 %vm476_vm1, %v4927_v1 }
 0x1a2   : > { %3493 = vmatmul.mubr.bf16.gmra.mxu1 %v4224_v32 }
 0x207   : > { %v5789_v33 = vpop.f32.mrf.mxu0 }
 0x209   : > { %v2722_v55 = vpop.f32.mrf.mxu0 }
 0x20a   : > { %v4375_v44 = vpop.f32.mrf.mxu1 }
 0x20b   : > { %v5791_v10 = vpop.f32.mrf.mxu0 }
 0x20c   : > { %v4376_v45 = vpop.f32.mrf.mxu1 }
 0x20d   : > { %v4377_v48 = vadd.f32 %v4376_v45, %v4375_v44  ;;  %v2725_v22 = vpop.f32.mrf.mxu0 }
 0x20e   : > { %v4378_v47 = vpop.f32.mrf.mxu1 }
 0x20f   : > { %v2723_v18 = vadd.f32 %v4377_v48, %v2722_v55 }
 0x210   : > { %v4379_v37 = vpop.f32.mrf.mxu1 }
 0x211   : > { %v4380_v57 = vadd.f32 %v4379_v37, %v4378_v47 }
 0x212   : > { %v4381_v40 = vpop.f32.mrf.mxu1  ;;  %v5793_v2 = vpop.f32.mrf.mxu0 }
 0x213   : > { %v2726_v37 = vadd.f32 %v4380_v57, %v2725_v22 }
 0x214   : > { %v4382_v38 = vpop.f32.mrf.mxu1  ;;  %v5799_v7 = vpop.f32.mrf.mxu0 }
 0x215   : > { %v4383_v50 = vadd.f32 %v4382_v38, %v4381_v40 }
 0x216   : > { %v4384_v0 = vpop.f32.mrf.mxu1  ;;  %v5803_v8 = vpop.f32.mrf.mxu0 }
 0x218   : > { %v4385_v61 = vpop.f32.mrf.mxu1  ;;  %v5809_v62 = vpop.f32.mrf.mxu0 }
 0x21a   : > { %v4387_v11 = vpop.f32.mrf.mxu1 }
 0x21c   : > { %v4388_v41 = vpop.f32.mrf.mxu1 }
 0x21d   : > { %v5795_v3 = vadd.f32 %v4388_v41, %v4387_v11  ;;  %v2731_v11 = vadd.f32 %v5789_v33, %v4383_v50  ;;  %v4386_v41 = vadd.f32 %v4385_v61, %v4384_v0  ;;  %v5840_v33 = vld [vmem:[%s5953_s4] ss:$0 sm:$0xff] }
 0x21e   : > { %v5797_v5 = vpop.f32.mrf.mxu1 }
 0x220   : > { %v5801_v19 = vpop.f32.mrf.mxu1 }
 0x222   : > { %v4393_v23 = vpop.f32.mrf.mxu1 }
 0x224   : > { %v4394_v9 = vpop.f32.mrf.mxu1 }
 0x225   : > { %v5805_v25 = vadd.f32 %v4394_v9, %v4393_v23 }
 0x226   : > { %v5807_v12 = vpop.f32.mrf.mxu1 }
 0x227   : > { %v4652_v13 = vpop.f32.mrf.mxu0 }
 0x228   : > { %v5811_v27 = vpop.f32.mrf.mxu1 }
 0x229   : > { %v3020_v60 = vpop.f32.mrf.mxu0 }
 0x22a   : > { %v4427_v58 = vpop.f32.mrf.mxu1 }
 0x22b   : > { %v5813_v63 = vpop.f32.mrf.mxu0 }
 0x22c   : > { %v4428_v59 = vpop.f32.mrf.mxu1 }
 0x22d   : > { %v3023_v6 = vpop.f32.mrf.mxu0  ;;  %v4429_v36 = vadd.f32 %v4428_v59, %v4427_v58 }
 0x22e   : > { %v4430_v14 = vpop.f32.mrf.mxu1 }
 0x22f   : > { %v5815_v51 = vpop.f32.mrf.mxu0  ;;  %v2956_v1 = vadd.f32 %v4429_v36, %v2723_v18  ;;  %v4392_v36 = vadd.f32 %v5801_v19, %v5797_v5  ;;  %v5852_v5 = vld [vmem:[%s5956_s7] ss:$0 sm:$0xff] }
 0x230   : > { %v4431_v16 = vpop.f32.mrf.mxu1 }
 0x231   : > { %v5817_v26 = vpop.f32.mrf.mxu0  ;;  %v4432_v32 = vadd.f32 %v4431_v16, %v4430_v14  ;;  %v3021_v58 = vadd.f32 %v3020_v60, %v2956_v1 }
 0x232   : > { %v4433_v17 = vpop.f32.mrf.mxu1 }
 0x233   : > { %v5819_v34 = vpop.f32.mrf.mxu0  ;;  %v2959_v59 = vadd.f32 %v4432_v32, %v2726_v37 }
 0x234   : > { %v4434_v20 = vpop.f32.mrf.mxu1  ;;  %5966 = vst [vmem:[#allocation6_spill] sm:$0xff] %v5819_v34 }
 0x235   : > { %v5825_v54 = vpop.f32.mrf.mxu0  ;;  %v4435_v45 = vadd.f32 %v4434_v20, %v4433_v17  ;;  %v2734_v20 = vadd.f32 %v5791_v10, %v4386_v41  ;;  %v3024_v50 = vadd.f32 %v3023_v6, %v2959_v59 }
 0x236   : > { %v4436_v21 = vpop.f32.mrf.mxu1 }
 0x237   : > { %v2964_v55 = vadd.f32 %v4435_v45, %v2731_v11 }
 0x238   : > { %v4437_v4 = vpop.f32.mrf.mxu1 }
 0x239   : > { %v4438_v34 = vadd.f32 %v4437_v4, %v4436_v21  ;;  %v3029_v61 = vadd.f32 %v4652_v13, %v2964_v55  ;;  %v4398_v55 = vadd.f32 %v5811_v27, %v5807_v12 }
 0x23a   : > { %v4439_v52 = vpop.f32.mrf.mxu1 }
 0x23b   : > { %v2967_v60 = vadd.f32 %v4438_v34, %v2734_v20 }
 0x23c   : > { %v4440_v24 = vpop.f32.mrf.mxu1 }
 0x23e   : > { %v4442_v29 = vpop.f32.mrf.mxu1 }
 0x240   : > { %v4443_v30 = vpop.f32.mrf.mxu1 }
 0x241   : > { %v4444_v32 = vadd.f32 %v4443_v30, %v4442_v29 }
 0x242   : > { %v5821_v49 = vpop.f32.mrf.mxu1 }
 0x244   : > { %v5823_v56 = vpop.f32.mrf.mxu1 }
 0x246   : > { %v5827_v28 = vpop.f32.mrf.mxu1 }
 0x247   : > { %v4676_v31 = vpop.f32.mrf.mxu0 }
 0x248   : > { %v5829_v46 = vpop.f32.mrf.mxu1 }
 0x249   : > { %v3535_v35 = vpop.f32.mrf.mxu0 }
 0x24a   : > { %v4479_v39 = vpop.f32.mrf.mxu1 }
 0x24b   : > { %v4677_v42 = vpop.f32.mrf.mxu0 }
 0x24c   : > { %v4480_v43 = vpop.f32.mrf.mxu1 }
 0x24d   : > { %v3538_v15 = vpop.f32.mrf.mxu0  ;;  %v4481_v53 = vadd.f32 %v4480_v43, %v4479_v39 }
 0x24e   : > { %v4482_v44 = vpop.f32.mrf.mxu1 }
 0x24f   : > { %v5831_v47 = vpop.f32.mrf.mxu0  ;;  %v3536_v40 = vadd.f32 %v4481_v53, %v3535_v35  ;;  %v4441_v35 = vadd.f32 %v4440_v24, %v4439_v52  ;;  %v3032_v52 = vadd.f32 %v5813_v63, %v2967_v60 }
 0x250   : > { %v4483_v38 = vpop.f32.mrf.mxu1 }
 0x251   : > { %v3551_v23 = vpop.f32.mrf.mxu0  ;;  %v4484_v9 = vadd.f32 %v4483_v38, %v4482_v44  ;;  %v3566_v17 = vadd.f32 %v3536_v40, %v3021_v58  ;;  %v4447_v38 = vadd.f32 %v5823_v56, %v5821_v49 }
 0x252   : > { %v4485_v48 = vpop.f32.mrf.mxu1 }
 0x253   : > { %v5834_v39 = vpop.f32.mrf.mxu0  ;;  %v3539_v14 = vadd.f32 %v4484_v9, %v3538_v15  ;;  %v3581_v18 = vadd.f32 %v5840_v33, %v3566_v17  ;;  %v2739_v15 = vadd.f32 %v5795_v3, %v5799_v7  ;;  %v2742_v3 = vadd.f32 %v4392_v36, %v5809_v62 }
 0x254   : > { %v4486_v16 = vpop.f32.mrf.mxu1 }
 0x255   : > { %v3554_v57 = vpop.f32.mrf.mxu0  ;;  %v4487_v22 = vadd.f32 %v4486_v16, %v4485_v48  ;;  %v3567_v43 = vadd.f32 %v3539_v14, %v3024_v50  ;;  %v2972_v24 = vadd.f32 %v4441_v35, %v2739_v15  ;;  %v2975_v40 = vadd.f32 %v4444_v32, %v2742_v3 }
 0x256   : > { %v4488_v0 = vpop.f32.mrf.mxu1  ;;  %v2747_v48 = vadd.f32 %v5793_v2, %v5805_v25  ;;  %v4450_v25 = vadd.f32 %v5829_v46, %v5827_v28  ;;  %v2750_v35 = vadd.f32 %v5803_v8, %v4398_v55 }
 0x257   : > { %v3544_v21 = vadd.f32 %v4676_v31, %v4487_v22  ;;  %v4686_v4 = vpop.f32.mrf.mxu0  ;;  %v3582_v7 = vadd.f32 %v5840_v33, %v3567_v43  ;;  %v3037_v9 = vadd.f32 %v5817_v26, %v2972_v24 }
 0x258   : > { %v4489_v10 = vpop.f32.mrf.mxu1  ;;  %v2980_v22 = vadd.f32 %v4447_v38, %v2747_v48 }
 0x259   : > { %v3568_v53 = vadd.f32 %v3544_v21, %v3029_v61  ;;  %v3669_v1 = vpop.f32.mrf.mxu0  ;;  %v4490_v6 = vadd.f32 %v4489_v10, %v4488_v0 }
 0x25a   : > { %v3700_v13 = vadd.f32 %v3669_v1, %v3581_v18  ;;  %v4491_v34 = vpop.f32.mrf.mxu1  ;;  %v3045_v15 = vadd.f32 %v5815_v51, %v2980_v22 }
 0x25b   : > { %v3583_v31 = vadd.f32 %v5840_v33, %v3568_v53  ;;  %v3547_v19 = vadd.f32 %v4677_v42, %v4490_v6  ;;  %v4687_v44 = vpop.f32.mrf.mxu0 }
 0x25c   : > { %v4492_v45 = vpop.f32.mrf.mxu1  ;;  %v3715_v11 = vadd.f32 %v5852_v5, %v3700_v13 }
 0x25d   : > { %v3702_v29 = vadd.f32 %v4686_v4, %v3583_v31  ;;  %v3569_v30 = vadd.f32 %v3547_v19, %v3032_v52  ;;  %v3672_v63 = vpop.f32.mrf.mxu0  ;;  %v4493_v37 = vadd.f32 %v4492_v45, %v4491_v34  ;;  %v5967_v52 = vld [vmem:[#allocation6_spill] sm:$0xff] }
 0x25e   : > { %v3701_v41 = vadd.f32 %v3672_v63, %v3582_v7  ;;  %v4494_v42 = vpop.f32.mrf.mxu1  ;;  %v3723_v50 = vmax.f32 %v3715_v11, 0.0 }
 0x25f   : > { %v3584_v62 = vadd.f32 %v5840_v33, %v3569_v30  ;;  %v3552_v58 = vadd.f32 %v4493_v37, %v3551_v23  ;;  %v4690_v59 = vpop.f32.mrf.mxu0  ;;  %v3717_v14 = vadd.f32 %v5852_v5, %v3702_v29  ;;  %v3040_v23 = vadd.f32 %v5825_v54, %v2975_v40 }
 0x260   : > { %v3716_v49 = vadd.f32 %v5852_v5, %v3701_v41  ;;  %v4495_v56 = vpop.f32.mrf.mxu1 }
 0x261   : > { %v3703_v16 = vadd.f32 %v4687_v44, %v3584_v62  ;;  %v4496_v17 = vadd.f32 %v4495_v56, %v4494_v42  ;;  %v3570_v26 = vadd.f32 %v3552_v58, %v3037_v9  ;;  %v3685_v20 = vpop.f32.mrf.mxu0  ;;  %v3725_v21 = vmax.f32 %v3717_v14, 0.0 }
 0x262   : > { %v3724_v0 = vmax.f32 %v3716_v49, 0.0  ;;  %v4497_v2 = vpop.f32.mrf.mxu1 }
 0x263   : > { %v3718_v12 = vadd.f32 %v5852_v5, %v3703_v16  ;;  %v3555_v27 = vadd.f32 %v4496_v17, %v3554_v57  ;;  %v3585_v61 = vadd.f32 %v5840_v33, %v3570_v26  ;;  %v4691_v60 = vpop.f32.mrf.mxu0  ;;  %v2983_v57 = vadd.f32 %v4450_v25, %v2750_v35 }
 0x264   : > { %v4294_v4 = vpack.c.bf16 %v3724_v0, %v3723_v50  ;;  %v4498_v36 = vpop.f32.mrf.mxu1 }
 0x265   : > { %v3726_v18 = vmax.f32 %v3718_v12, 0.0  ;;  %v4499_v54 = vadd.f32 %v4498_v36, %v4497_v2  ;;  %v3704_v10 = vadd.f32 %v3685_v20, %v3585_v61  ;;  %v3571_v43 = vadd.f32 %v3555_v27, %v3040_v23  ;;  %v3688_v46 = vpop.f32.mrf.mxu0 }
 0x266   : > { %4295 = vst [vmem:[%s5877_s14] sm:$0xff] %v4294_v4   ;;  %v4500_v28 = vpop.f32.mrf.mxu1  ;;  %v3048_v24 = vadd.f32 %v5967_v52, %v2983_v57 }
 0x267   : > { %v4299_v53 = vpack.c.bf16 %v3726_v18, %v3725_v21  ;;  %v3560_v8 = vadd.f32 %v5831_v47, %v4499_v54  ;;  %v3586_v1 = vadd.f32 %v5840_v33, %v3571_v43  ;;  %v3719_v13 = vadd.f32 %v5852_v5, %v3704_v10 }
 0x268   : > { %v4501_v6 = vpop.f32.mrf.mxu1 }
 0x269   : > { %4311 = vst [vmem:[%s5877_s14 + $0x8] sm:$0xff] %v4299_v53   ;;  %v3572_v32 = vadd.f32 %v3560_v8, %v3045_v15  ;;  %v4502_v51 = vadd.f32 %v4501_v6, %v4500_v28  ;;  %v3705_v34 = vadd.f32 %v3688_v46, %v3586_v1  ;;  %v3727_v3 = vmax.f32 %v3719_v13, 0.0 }
 0x26b   : > { %v3587_v31 = vadd.f32 %v5840_v33, %v3572_v32  ;;  %v3563_v19 = vadd.f32 %v5834_v39, %v4502_v51  ;;  %v3720_v47 = vadd.f32 %v5852_v5, %v3705_v34 }
 0x26d   : > { %v3706_v44 = vadd.f32 %v4690_v59, %v3587_v31  ;;  %v3573_v7 = vadd.f32 %v3563_v19, %v3048_v24  ;;  %v3728_v45 = vmax.f32 %v3720_v47, 0.0 }
 0x26f   : > { %v3588_v29 = vadd.f32 %v5840_v33, %v3573_v7  ;;  %v4304_v30 = vpack.c.bf16 %v3728_v45, %v3727_v3  ;;  %v3721_v63 = vadd.f32 %v5852_v5, %v3706_v44 }
 0x271   : > { %v3707_v37 = vadd.f32 %v4691_v60, %v3588_v29  ;;  %4312 = vst [vmem:[%s5877_s14 + $0x10] sm:$0xff] %v4304_v30   ;;  %v3729_v39 = vmax.f32 %v3721_v63, 0.0 }
 0x273   : > { %v3722_v40 = vadd.f32 %v5852_v5, %v3707_v37 }
 0x275   : > { %v3730_v38 = vmax.f32 %v3722_v40, 0.0 }
 0x277   : > { %v4309_v33 = vpack.c.bf16 %v3730_v38, %v3729_v39 }
 0x279   : > { %4313 = vst [vmem:[%s5877_s14 + $0x18] sm:$0xff] %v4309_v33  }
 0x27a   : > { %4941 = shalt.err (!%p4938_p6)
}
 0x27b   : > { %s4942_s11 = scalar_lea.hbm %s5897_s21, 512  ;;  %s4946_s19 = scalar_lea.hbm %s5957_s8, 1024 }
 0x27c   : > { %p4943_p7 = scmp.ne.s32.totalorder %s5897_s21, %s4942_s11  ;;  %p4947_p11 = scmp.lt.s32.totalorder %s5897_s21, %s5957_s8 }
 0x27d   : > { %p4948_p12 = scmp.lt.s32.totalorder %s4946_s19, %s4942_s11 }
 0x27e   : > { %p4944_p9 = pnand %p4943_p7, %p5095_p4 }
 0x27f   : > { %p4949_p13 = por %p4948_p12, %p4947_p11 }
 0x280   : > { %p4945_p10 = pneg %p4944_p9 }
 0x282   : > { %p4950_p0 = pnand %p4949_p13, %p4945_p10 }
 0x284   : > { %4953 = shalt.err (!%p4950_p0)
}
 0x285   : > { %s5008_s23 = smov 64   ;;  %s5009_s30 = smov 4  }
 0x286   : > { %4706 = dma.vmem_to_hbm [thread:$0]  (%p5095_p4), %s5899_s16, 512, %s5897_s21, %s5904_s26, %s5008_s23, %s5008_s23, %s5009_s30  }
 0x287 PF: > { %p4712_p1 = scmp.ge.s32.totalorder %s5004_s10, 2  ;;  %s3801_s24 = sand.u32 1, %s4984_s27  }
 0x288   : > { %s3802_s25 = scalar_lea.sflag [#allocation4], %s3801_s24 }
 0x289   : > { %p4709_p2 = pnand %p4712_p1, %p5102_p8 }
 0x28b   : > { %p4710_p3 = pneg %p4709_p2 }
 0x28d   : > { %4979 = dma.done.wait (%p4710_p3), %s3802_s25, 512  }
 0x28e   : > { %4981 = vsyncadd (%p4710_p3), %s3802_s25, 4294966784  ;;  %s21_s10 = sadd.s32 1, %s5004_s10   ;;  %s5968_s27 = smov %s4988_s28 }
 0x28f   : > { %p18_p5 = scmp.ge.s32.totalorder %s21_s10, 4   ;;  %s5969_s28 = smov %s4992_s29 }
 0x290   : > { %s5970_s29 = smov %s5108_s18  ;;  %s5971_s30 = smov %s5000_s9 }
 0x291   : > { %s5972_s9 = smov %s5974_s13  ;;  %20 = sbr.rel (!%p18_p5) target bundleno = 4 (0x4), region = 114 }
 0x296   :  { %3807 = vsyncpa [#allocation4], 1 }
 0x297   :  { %3809 = vsyncpa [#allocation4 + $0x1], 1 }

</bundles_post_ra>
